<compile_context>
chip_gen: v6e
topology: v6e:2x2x1
jax: 0.10.0
libtpu: 0.0.40
codegen_flags: <defaults>
</compile_context>

<pallas_src>
import functools

import numpy as np
import jax
import jax.numpy as jnp
from jax import lax
from jax.experimental import pallas as pl
from jax.experimental.pallas import tpu as pltpu


def _round_up(x, m):
    return ((x + m - 1) // m) * m


# ---------------------------------------------------------------------------
# Kernel: serial GRU recurrence over precomputed input gates.
# ---------------------------------------------------------------------------
def gru_recurrence_kernel(len_ref, gx_ref, wh_ref, bhn_ref, out_ref, *, t_blk):
    tb = pl.program_id(1)                       # time-block index (serial axis)

    @pl.when(tb == 0)
    def _():
        out_ref[...] = jnp.zeros_like(out_ref)  # h0 = 0 for this batch tile

    h_pad = out_ref.shape[-1]
    lengths = len_ref[...]                      # [B_TILE, 1] int32
    w_h = wh_ref[...]                           # [H_pad, 3*H_pad] fused W_h
    b_hn = bhn_ref[...]                         # [1, H_pad]
    t0 = tb * t_blk

    def step(i, h):
        gx = gx_ref[i]                          # [B_TILE, 3*H_pad] = x_t@W_i + b
        gh = jnp.dot(h, w_h, preferred_element_type=jnp.float32)
        r = jax.nn.sigmoid(gx[:, 0:h_pad] + gh[:, 0:h_pad])
        z = jax.nn.sigmoid(gx[:, h_pad:2 * h_pad] + gh[:, h_pad:2 * h_pad])
        n = jnp.tanh(gx[:, 2 * h_pad:] + r * (gh[:, 2 * h_pad:] + b_hn))
        h_new = (1.0 - z) * n + z * h
        mask = lengths > (t0 + i)               # pack_padded_sequence semantics
        return jnp.where(mask, h_new, h)

    out_ref[...] = lax.fori_loop(0, t_blk, step, out_ref[...], unroll=True)


# ---------------------------------------------------------------------------
# Parameter prep: fuse gates, merge biases, pad H to a multiple of 128.
# ---------------------------------------------------------------------------
def prepare_gru_params(W_ih, W_hh, b_ih, b_hh):
    """W_ih: [3H, E], W_hh: [3H, H], b_ih/b_hh: [3H]  (PyTorch nn.GRU layout)."""
    H = W_hh.shape[1]
    H_pad = _round_up(H, 128)

    def pad_cols(w):                         # [K, H] -> [K, H_pad]
        return jnp.pad(w, ((0, 0), (0, H_pad - H)))

    def pad_vec(v):                          # [H] -> [H_pad]
        return jnp.pad(v, (0, H_pad - H))

    wir, wiz, win = W_ih[:H].T, W_ih[H:2 * H].T, W_ih[2 * H:].T   # [E, H]
    whr, whz, whn = W_hh[:H].T, W_hh[H:2 * H].T, W_hh[2 * H:].T   # [H, H]

    w_i = jnp.concatenate([pad_cols(wir), pad_cols(wiz), pad_cols(win)], axis=1)
    w_h = jnp.concatenate([pad_cols(whr), pad_cols(whz), pad_cols(whn)], axis=1)
    w_h = jnp.pad(w_h, ((0, H_pad - H), (0, 0)))                  # [H_pad, 3H_pad]

    # Merge biases that fold into the precomputed input projection:
    #   r: b_ir + b_hr, z: b_iz + b_hz, n: b_in  (b_hn stays in-loop, scaled by r)
    b_i = jnp.concatenate([pad_vec(b_ih[:H] + b_hh[:H]),
                           pad_vec(b_ih[H:2 * H] + b_hh[H:2 * H]),
                           pad_vec(b_ih[2 * H:])]).reshape(1, 3 * H_pad)
    b_hn = pad_vec(b_hh[2 * H:]).reshape(1, H_pad)

    return dict(w_i=w_i, w_h=w_h, b_i=b_i, b_hn=b_hn, H=H, H_pad=H_pad)


# ---------------------------------------------------------------------------
# Wrapper: hoisted input GEMM + padding + pallas_call.
# ---------------------------------------------------------------------------
def gru_last_hidden(x_ble, lengths_b, gp, *, t_blk=8):
    """x_ble: [B, L, E] f32, lengths_b: [B] int -> [B, H] f32 final hidden."""
    B, L, E = x_ble.shape
    H, H_pad = gp["H"], gp["H_pad"]
    G = 3 * H_pad

    # Cap the serial loop at the longest real sequence (host-computable; this
    # is a wrapper-level sync, not part of the kernel).
    l_max = int(np.asarray(jnp.max(lengths_b)))
    l_run = max(min(l_max, L), 1)
    l_pad = _round_up(l_run, t_blk)
    lc = min(l_pad, L)

    # Hoisted input projection: one big GEMM for all timesteps, producing the
    # time-major gate stream [L, B, 3*H_pad] (transpose fused into contraction).
    gx = jnp.einsum("ble,eg->lbg", x_ble[:, :lc, :], gp["w_i"],
                    precision=lax.Precision.HIGHEST) + gp["b_i"]
    if l_pad > lc:  # extra (masked) timesteps so the time grid divides evenly
        gx = jnp.pad(gx, ((0, l_pad - lc), (0, 0), (0, 0)))

    # Pad batch to a sublane/tile-friendly size; padded rows have length 0.
    b_pad8 = _round_up(B, 8)
    b_tile = b_pad8 if b_pad8 <= 256 else 256
    b_pad = _round_up(B, b_tile)
    if b_pad > B:
        gx = jnp.pad(gx, ((0, 0), (0, b_pad - B), (0, 0)))
    lengths_2d = jnp.pad(lengths_b.astype(jnp.int32),
                         (0, b_pad - B)).reshape(b_pad, 1)

    grid = (b_pad // b_tile, l_pad // t_blk)

    h = pl.pallas_call(
        functools.partial(gru_recurrence_kernel, t_blk=t_blk),
        out_shape=jax.ShapeDtypeStruct((b_pad, H_pad), jnp.float32),
        grid_spec=pltpu.PrefetchScalarGridSpec(
            num_scalar_prefetch=0,
            grid=grid,
            in_specs=[
                pl.BlockSpec((b_tile, 1), lambda b, t: (b, 0)),            # lengths
                pl.BlockSpec((t_blk, b_tile, G), lambda b, t: (t, b, 0)),  # gx
                pl.BlockSpec((H_pad, G), lambda b, t: (0, 0)),             # W_h fused
                pl.BlockSpec((1, H_pad), lambda b, t: (0, 0)),             # b_hn
            ],
            out_specs=pl.BlockSpec((b_tile, H_pad), lambda b, t: (b, 0)),
        ),
        compiler_params=pltpu.CompilerParams(
            dimension_semantics=("parallel", "arbitrary")),   # time = recurrence
    )(lengths_2d, gx, gp["w_h"], gp["b_hn"])

    return h[:B, :H]


def body_encoder_forward(x_body, seq_lengths, num_seq_in_body, gru_params):
    """x_body: [N, S, L, E], seq_lengths: [N, S], num_seq_in_body: [N] (host np)."""
    N, S, L, E = x_body.shape
    B = N * S
    x_flat = x_body.reshape(B, L, E)
    lengths_flat = seq_lengths.reshape(B)

    h_all = gru_last_hidden(x_flat, lengths_flat, gru_params)    # [B, H]
    H = gru_params["H"]
    h_grid = h_all.reshape(N, S, H)

    # Reproduce mask + split(num_seq_in_body) + pad_sequence: per body, move
    # non-empty slots to the front (stable order), zero beyond the group size.
    # (The gather/pad is data-dependent reshuffling -> plain JAX, not Pallas.)
    counts = jnp.asarray(num_seq_in_body, dtype=jnp.int32)               # [N]
    nonzero = seq_lengths != 0                                           # [N, S]
    order = jnp.argsort(jnp.where(nonzero, 0, 1).astype(jnp.int32),
                        axis=1, stable=True)                             # [N, S]
    h_compact = jnp.take_along_axis(h_grid, order[:, :, None], axis=1)   # [N, S, H]
    valid = jnp.arange(S, dtype=jnp.int32)[None, :] < counts[:, None]    # [N, S]
    h_compact = jnp.where(valid[:, :, None], h_compact, 0.0)

    max_group = int(np.max(np.asarray(num_seq_in_body)))
    return h_compact[:, :max_group, :]                                   # [N, G, H]


# ---------------------------------------------------------------------------
# Pure-JAX / numpy reference (mirrors the PyTorch code path) for checking.
# ---------------------------------------------------------------------------
def gru_reference(x_ble, lengths_b, W_ih, W_hh, b_ih, b_hh):
    H = W_hh.shape[1]
    wir, wiz, win = W_ih[:H].T, W_ih[H:2 * H].T, W_ih[2 * H:].T
    whr, whz, whn = W_hh[:H].T, W_hh[H:2 * H].T, W_hh[2 * H:].T
    b_ir, b_iz, b_in = b_ih[:H], b_ih[H:2 * H], b_ih[2 * H:]
    b_hr, b_hz, b_hn = b_hh[:H], b_hh[H:2 * H], b_hh[2 * H:]
    dot = lambda a, b: jnp.dot(a, b, precision=lax.Precision.HIGHEST)

    B, L, E = x_ble.shape

    def step(h, inp):
        x_t, t = inp
        r = jax.nn.sigmoid(dot(x_t, wir) + b_ir + dot(h, whr) + b_hr)
        z = jax.nn.sigmoid(dot(x_t, wiz) + b_iz + dot(h, whz) + b_hz)
        n = jnp.tanh(dot(x_t, win) + b_in + r * (dot(h, whn) + b_hn))
        h_new = (1.0 - z) * n + z * h
        mask = (lengths_b > t)[:, None]
        return jnp.where(mask, h_new, h), None

    h0 = jnp.zeros((B, H), jnp.float32)
    h, _ = lax.scan(step, h0, (jnp.swapaxes(x_ble, 0, 1), jnp.arange(L)))
    return h


def body_encoder_reference(x_body, seq_lengths, num_seq_in_body,
                           W_ih, W_hh, b_ih, b_hh):
    """Numpy re-implementation of mask -> GRU -> split -> pad_sequence."""
    N, S, L, E = x_body.shape
    B = N * S
    H = W_hh.shape[1]
    h_flat = np.asarray(gru_reference(x_body.reshape(B, L, E),
                                      seq_lengths.reshape(B).astype(jnp.int32),
                                      W_ih, W_hh, b_ih, b_hh))
    mask = np.asarray(seq_lengths).reshape(B) != 0
    h_masked = h_flat[mask]                                   # row-major order
    counts = np.asarray(num_seq_in_body)
    groups = np.split(h_masked, np.cumsum(counts)[:-1])
    max_group = int(counts.max())
    out = np.zeros((N, max_group, H), np.float32)
    for i, g in enumerate(groups):
        out[i, :len(g)] = g
    return out


if __name__ == "__main__":
    # Small shapes consistent with the module.
    N, S, L = 2, 3, 8          # bodies, max seqs per body, max seq length
    E, H = 16, 32              # embedding_dim, hidden_dim

    key = jax.random.PRNGKey(0)
    k_x, k_wi, k_wh, k_bi, k_bh = jax.random.split(key, 5)

    x_body = jax.random.normal(k_x, (N, S, L, E), dtype=jnp.float32)
    # Note: body 0 has a non-empty sequence in a NON-leading slot (slot 2) and
    # body 1's only sequence sits in slot 1 — exercises the compaction path.
    seq_lengths = jnp.array([[5, 0, 3],
                             [0, 8, 0]], dtype=jnp.int32)          # [N, S]
    num_seq_in_body = np.array([2, 1], dtype=np.int32)             # [N]

    # nn.GRU init: U(-1/sqrt(H), 1/sqrt(H)); weight_ih: [3H, E], weight_hh: [3H, H]
    bound = 1.0 / np.sqrt(H)
    W_ih = jax.random.uniform(k_wi, (3 * H, E), jnp.float32, -bound, bound)
    W_hh = jax.random.uniform(k_wh, (3 * H, H), jnp.float32, -bound, bound)
    b_ih = jax.random.uniform(k_bi, (3 * H,), jnp.float32, -bound, bound)
    b_hh = jax.random.uniform(k_bh, (3 * H,), jnp.float32, -bound, bound)

    gru_params = prepare_gru_params(W_ih, W_hh, b_ih, b_hh)

    h_body = body_encoder_forward(x_body, seq_lengths, num_seq_in_body, gru_params)
    h_body = jax.block_until_ready(h_body)

    # Correctness check against a reference that mirrors the PyTorch path
    # (mask -> GRU -> split by num_seq_in_body -> pad_sequence).
    h_ref = body_encoder_reference(x_body, seq_lengths, num_seq_in_body,
                                   W_ih, W_hh, b_ih, b_hh)
    np.testing.assert_allclose(np.asarray(h_body), h_ref, rtol=1e-4, atol=1e-4)

    max_group = int(np.max(num_seq_in_body))
    assert h_body.shape == (N, max_group, H)
    print("KERNEL_OK")
</pallas_src>

<mosaic_0001>
module attributes {stable_mosaic.version = 11 : i64} {
  func.func @gru_recurrence_kernel(%arg0: i32, %arg1: i32, %arg2: memref<8x1xi32, #tpu.memory_space<vmem>>, %arg3: memref<8x8x384xf32, #tpu.memory_space<vmem>>, %arg4: memref<128x384xf32, #tpu.memory_space<vmem>>, %arg5: memref<1x128xf32, #tpu.memory_space<vmem>>, %arg6: memref<8x128xf32, #tpu.memory_space<vmem>>) attributes {dimension_semantics = [#tpu.dimension_semantics<parallel>, #tpu.dimension_semantics<arbitrary>], iteration_bounds = array<i64: 1, 1>, scalar_prefetch = 0 : i64, scratch_operands = 0 : i64, tpu.core_type = #tpu.core_type<tc>, window_params = [{transform_indices = @transform_0, window_bounds = array<i64: 8, 1>}, {transform_indices = @transform_1, window_bounds = array<i64: 8, 8, 384>}, {pipeline_mode = #tpu.pipeline_mode<synchronous>, transform_indices = @transform_2, window_bounds = array<i64: 128, 384>}, {pipeline_mode = #tpu.pipeline_mode<synchronous>, transform_indices = @transform_3, window_bounds = array<i64: 1, 128>}, {transform_indices = @transform_4, window_bounds = array<i64: 8, 128>}]} {
    %c0_i32 = arith.constant 0 : i32
    %0 = arith.cmpi eq, %arg1, %c0_i32 : i32
    %1 = arith.extui %0 : i1 to i32
    %c0_i32_0 = arith.constant 0 : i32
    %2 = arith.cmpi ne, %1, %c0_i32_0 : i32
    scf.if %2 {
      %cst_59 = arith.constant 0.000000e+00 : f32
      %313 = vector.broadcast %cst_59 : f32 to vector<8x128xf32>
      %c0_60 = arith.constant 0 : index
      %c0_61 = arith.constant 0 : index
      %314 = vector.load %arg6[%c0_60, %c0_61] : memref<8x128xf32, #tpu.memory_space<vmem>>, vector<8x128xf32>
      tpu.vector_store %arg6[%c0_60, %c0_61], %313 {strides = array<i32>} : memref<8x128xf32, #tpu.memory_space<vmem>>, vector<8x128xf32>,
    } else {
    }
    %c0 = arith.constant 0 : index
    %c0_1 = arith.constant 0 : index
    %3 = vector.load %arg2[%c0, %c0_1] : memref<8x1xi32, #tpu.memory_space<vmem>>, vector<8x1xi32>
    %c0_2 = arith.constant 0 : index
    %c0_3 = arith.constant 0 : index
    %4 = vector.load %arg4[%c0_2, %c0_3] : memref<128x384xf32, #tpu.memory_space<vmem>>, vector<128x384xf32>
    %c0_4 = arith.constant 0 : index
    %c0_5 = arith.constant 0 : index
    %5 = vector.load %arg5[%c0_4, %c0_5] : memref<1x128xf32, #tpu.memory_space<vmem>>, vector<1x128xf32>
    %c8_i32 = arith.constant 8 : i32
    %6 = arith.muli %arg1, %c8_i32 : i32
    %c0_6 = arith.constant 0 : index
    %c0_7 = arith.constant 0 : index
    %7 = vector.load %arg6[%c0_6, %c0_7] : memref<8x128xf32, #tpu.memory_space<vmem>>, vector<8x128xf32>
    %c0_i32_8 = arith.constant 0 : i32
    %8 = arith.index_cast %c0_i32_8 : i32 to index
    %c0_9 = arith.constant 0 : index
    %c0_10 = arith.constant 0 : index
    %9 = vector.load %arg3[%8, %c0_9, %c0_10] : memref<8x8x384xf32, #tpu.memory_space<vmem>>, vector<1x8x384xf32>
    %10 = vector.shape_cast %9 : vector<1x8x384xf32> to vector<8x384xf32>
    %cst = arith.constant dense<0.000000e+00> : vector<8x384xf32>
    %11 = tpu.matmul %7, %4, %cst {dimension_numbers = #tpu.dot_dimension_numbers<[1], [0], [0], [1], [0, 0, 1, 1], [], []>} : vector<8x128xf32>, vector<128x384xf32>, vector<8x384xf32> -> vector<8x384xf32>
    %12 = vector.extract_strided_slice %10 {offsets = [0, 0], sizes = [8, 128], strides = [1, 1]} : vector<8x384xf32> to vector<8x128xf32>
    %13 = vector.extract_strided_slice %11 {offsets = [0, 0], sizes = [8, 128], strides = [1, 1]} : vector<8x384xf32> to vector<8x128xf32>
    %14 = arith.addf %12, %13 : vector<8x128xf32>
    %15 = arith.negf %14 : vector<8x128xf32>
    %16 = math.exp %15 : vector<8x128xf32>
    %cst_11 = arith.constant 1.000000e+00 : f32
    %17 = vector.broadcast %cst_11 : f32 to vector<8x128xf32>
    %18 = arith.addf %17, %16 : vector<8x128xf32>
    %19 = arith.divf %17, %18 : vector<8x128xf32>
    %20 = vector.extract_strided_slice %10 {offsets = [0, 128], sizes = [8, 128], strides = [1, 1]} : vector<8x384xf32> to vector<8x128xf32>
    %21 = vector.extract_strided_slice %11 {offsets = [0, 128], sizes = [8, 128], strides = [1, 1]} : vector<8x384xf32> to vector<8x128xf32>
    %22 = arith.addf %20, %21 : vector<8x128xf32>
    %23 = arith.negf %22 : vector<8x128xf32>
    %24 = math.exp %23 : vector<8x128xf32>
    %cst_12 = arith.constant 1.000000e+00 : f32
    %25 = vector.broadcast %cst_12 : f32 to vector<8x128xf32>
    %26 = arith.addf %25, %24 : vector<8x128xf32>
    %27 = arith.divf %25, %26 : vector<8x128xf32>
    %28 = vector.extract_strided_slice %10 {offsets = [0, 256], sizes = [8, 128], strides = [1, 1]} : vector<8x384xf32> to vector<8x128xf32>
    %29 = vector.extract_strided_slice %11 {offsets = [0, 256], sizes = [8, 128], strides = [1, 1]} : vector<8x384xf32> to vector<8x128xf32>
    %30 = vector.broadcast %5 : vector<1x128xf32> to vector<8x128xf32>
    %31 = arith.addf %29, %30 : vector<8x128xf32>
    %32 = arith.mulf %19, %31 : vector<8x128xf32>
    %33 = arith.addf %28, %32 : vector<8x128xf32>
    %34 = math.tanh %33 : vector<8x128xf32>
    %cst_13 = arith.constant 1.000000e+00 : f32
    %35 = vector.broadcast %cst_13 : f32 to vector<8x128xf32>
    %36 = arith.subf %35, %27 : vector<8x128xf32>
    %37 = arith.mulf %36, %34 : vector<8x128xf32>
    %38 = arith.mulf %27, %7 : vector<8x128xf32>
    %39 = arith.addf %37, %38 : vector<8x128xf32>
    %40 = arith.addi %6, %c0_i32_8 : i32
    %41 = vector.broadcast %40 : i32 to vector<8x1xi32>
    %42 = arith.cmpi sgt, %3, %41 : vector<8x1xi32>
    %43 = vector.shape_cast %42 : vector<8x1xi1> to vector<8x1xi1>
    %44 = vector.broadcast %43 : vector<8x1xi1> to vector<8x128xi1>
    %45 = arith.select %44, %39, %7 : vector<8x128xi1>, vector<8x128xf32>
    %c1_i32 = arith.constant 1 : i32
    %46 = arith.index_cast %c1_i32 : i32 to index
    %c0_14 = arith.constant 0 : index
    %c0_15 = arith.constant 0 : index
    %47 = vector.load %arg3[%46, %c0_14, %c0_15] : memref<8x8x384xf32, #tpu.memory_space<vmem>>, vector<1x8x384xf32>
    %48 = vector.shape_cast %47 : vector<1x8x384xf32> to vector<8x384xf32>
    %cst_16 = arith.constant dense<0.000000e+00> : vector<8x384xf32>
    %49 = tpu.matmul %45, %4, %cst_16 {dimension_numbers = #tpu.dot_dimension_numbers<[1], [0], [0], [1], [0, 0, 1, 1], [], []>} : vector<8x128xf32>, vector<128x384xf32>, vector<8x384xf32> -> vector<8x384xf32>
    %50 = vector.extract_strided_slice %48 {offsets = [0, 0], sizes = [8, 128], strides = [1, 1]} : vector<8x384xf32> to vector<8x128xf32>
    %51 = vector.extract_strided_slice %49 {offsets = [0, 0], sizes = [8, 128], strides = [1, 1]} : vector<8x384xf32> to vector<8x128xf32>
    %52 = arith.addf %50, %51 : vector<8x128xf32>
    %53 = arith.negf %52 : vector<8x128xf32>
    %54 = math.exp %53 : vector<8x128xf32>
    %cst_17 = arith.constant 1.000000e+00 : f32
    %55 = vector.broadcast %cst_17 : f32 to vector<8x128xf32>
    %56 = arith.addf %55, %54 : vector<8x128xf32>
    %57 = arith.divf %55, %56 : vector<8x128xf32>
    %58 = vector.extract_strided_slice %48 {offsets = [0, 128], sizes = [8, 128], strides = [1, 1]} : vector<8x384xf32> to vector<8x128xf32>
    %59 = vector.extract_strided_slice %49 {offsets = [0, 128], sizes = [8, 128], strides = [1, 1]} : vector<8x384xf32> to vector<8x128xf32>
    %60 = arith.addf %58, %59 : vector<8x128xf32>
    %61 = arith.negf %60 : vector<8x128xf32>
    %62 = math.exp %61 : vector<8x128xf32>
    %cst_18 = arith.constant 1.000000e+00 : f32
    %63 = vector.broadcast %cst_18 : f32 to vector<8x128xf32>
    %64 = arith.addf %63, %62 : vector<8x128xf32>
    %65 = arith.divf %63, %64 : vector<8x128xf32>
    %66 = vector.extract_strided_slice %48 {offsets = [0, 256], sizes = [8, 128], strides = [1, 1]} : vector<8x384xf32> to vector<8x128xf32>
    %67 = vector.extract_strided_slice %49 {offsets = [0, 256], sizes = [8, 128], strides = [1, 1]} : vector<8x384xf32> to vector<8x128xf32>
    %68 = vector.broadcast %5 : vector<1x128xf32> to vector<8x128xf32>
    %69 = arith.addf %67, %68 : vector<8x128xf32>
    %70 = arith.mulf %57, %69 : vector<8x128xf32>
    %71 = arith.addf %66, %70 : vector<8x128xf32>
    %72 = math.tanh %71 : vector<8x128xf32>
    %cst_19 = arith.constant 1.000000e+00 : f32
    %73 = vector.broadcast %cst_19 : f32 to vector<8x128xf32>
    %74 = arith.subf %73, %65 : vector<8x128xf32>
    %75 = arith.mulf %74, %72 : vector<8x128xf32>
    %76 = arith.mulf %65, %45 : vector<8x128xf32>
    %77 = arith.addf %75, %76 : vector<8x128xf32>
    %78 = arith.addi %6, %c1_i32 : i32
    %79 = vector.broadcast %78 : i32 to vector<8x1xi32>
    %80 = arith.cmpi sgt, %3, %79 : vector<8x1xi32>
    %81 = vector.shape_cast %80 : vector<8x1xi1> to vector<8x1xi1>
    %82 = vector.broadcast %81 : vector<8x1xi1> to vector<8x128xi1>
    %83 = arith.select %82, %77, %45 : vector<8x128xi1>, vector<8x128xf32>
    %c2_i32 = arith.constant 2 : i32
    %84 = arith.index_cast %c2_i32 : i32 to index
    %c0_20 = arith.constant 0 : index
    %c0_21 = arith.constant 0 : index
    %85 = vector.load %arg3[%84, %c0_20, %c0_21] : memref<8x8x384xf32, #tpu.memory_space<vmem>>, vector<1x8x384xf32>
    %86 = vector.shape_cast %85 : vector<1x8x384xf32> to vector<8x384xf32>
    %cst_22 = arith.constant dense<0.000000e+00> : vector<8x384xf32>
    %87 = tpu.matmul %83, %4, %cst_22 {dimension_numbers = #tpu.dot_dimension_numbers<[1], [0], [0], [1], [0, 0, 1, 1], [], []>} : vector<8x128xf32>, vector<128x384xf32>, vector<8x384xf32> -> vector<8x384xf32>
    %88 = vector.extract_strided_slice %86 {offsets = [0, 0], sizes = [8, 128], strides = [1, 1]} : vector<8x384xf32> to vector<8x128xf32>
    %89 = vector.extract_strided_slice %87 {offsets = [0, 0], sizes = [8, 128], strides = [1, 1]} : vector<8x384xf32> to vector<8x128xf32>
    %90 = arith.addf %88, %89 : vector<8x128xf32>
    %91 = arith.negf %90 : vector<8x128xf32>
    %92 = math.exp %91 : vector<8x128xf32>
    %cst_23 = arith.constant 1.000000e+00 : f32
    %93 = vector.broadcast %cst_23 : f32 to vector<8x128xf32>
    %94 = arith.addf %93, %92 : vector<8x128xf32>
    %95 = arith.divf %93, %94 : vector<8x128xf32>
    %96 = vector.extract_strided_slice %86 {offsets = [0, 128], sizes = [8, 128], strides = [1, 1]} : vector<8x384xf32> to vector<8x128xf32>
    %97 = vector.extract_strided_slice %87 {offsets = [0, 128], sizes = [8, 128], strides = [1, 1]} : vector<8x384xf32> to vector<8x128xf32>
    %98 = arith.addf %96, %97 : vector<8x128xf32>
    %99 = arith.negf %98 : vector<8x128xf32>
    %100 = math.exp %99 : vector<8x128xf32>
    %cst_24 = arith.constant 1.000000e+00 : f32
    %101 = vector.broadcast %cst_24 : f32 to vector<8x128xf32>
    %102 = arith.addf %101, %100 : vector<8x128xf32>
    %103 = arith.divf %101, %102 : vector<8x128xf32>
    %104 = vector.extract_strided_slice %86 {offsets = [0, 256], sizes = [8, 128], strides = [1, 1]} : vector<8x384xf32> to vector<8x128xf32>
    %105 = vector.extract_strided_slice %87 {offsets = [0, 256], sizes = [8, 128], strides = [1, 1]} : vector<8x384xf32> to vector<8x128xf32>
    %106 = vector.broadcast %5 : vector<1x128xf32> to vector<8x128xf32>
    %107 = arith.addf %105, %106 : vector<8x128xf32>
    %108 = arith.mulf %95, %107 : vector<8x128xf32>
    %109 = arith.addf %104, %108 : vector<8x128xf32>
    %110 = math.tanh %109 : vector<8x128xf32>
    %cst_25 = arith.constant 1.000000e+00 : f32
    %111 = vector.broadcast %cst_25 : f32 to vector<8x128xf32>
    %112 = arith.subf %111, %103 : vector<8x128xf32>
    %113 = arith.mulf %112, %110 : vector<8x128xf32>
    %114 = arith.mulf %103, %83 : vector<8x128xf32>
    %115 = arith.addf %113, %114 : vector<8x128xf32>
    %116 = arith.addi %6, %c2_i32 : i32
    %117 = vector.broadcast %116 : i32 to vector<8x1xi32>
    %118 = arith.cmpi sgt, %3, %117 : vector<8x1xi32>
    %119 = vector.shape_cast %118 : vector<8x1xi1> to vector<8x1xi1>
    %120 = vector.broadcast %119 : vector<8x1xi1> to vector<8x128xi1>
    %121 = arith.select %120, %115, %83 : vector<8x128xi1>, vector<8x128xf32>
    %c3_i32 = arith.constant 3 : i32
    %122 = arith.index_cast %c3_i32 : i32 to index
    %c0_26 = arith.constant 0 : index
    %c0_27 = arith.constant 0 : index
    %123 = vector.load %arg3[%122, %c0_26, %c0_27] : memref<8x8x384xf32, #tpu.memory_space<vmem>>, vector<1x8x384xf32>
    %124 = vector.shape_cast %123 : vector<1x8x384xf32> to vector<8x384xf32>
    %cst_28 = arith.constant dense<0.000000e+00> : vector<8x384xf32>
    %125 = tpu.matmul %121, %4, %cst_28 {dimension_numbers = #tpu.dot_dimension_numbers<[1], [0], [0], [1], [0, 0, 1, 1], [], []>} : vector<8x128xf32>, vector<128x384xf32>, vector<8x384xf32> -> vector<8x384xf32>
    %126 = vector.extract_strided_slice %124 {offsets = [0, 0], sizes = [8, 128], strides = [1, 1]} : vector<8x384xf32> to vector<8x128xf32>
    %127 = vector.extract_strided_slice %125 {offsets = [0, 0], sizes = [8, 128], strides = [1, 1]} : vector<8x384xf32> to vector<8x128xf32>
    %128 = arith.addf %126, %127 : vector<8x128xf32>
    %129 = arith.negf %128 : vector<8x128xf32>
    %130 = math.exp %129 : vector<8x128xf32>
    %cst_29 = arith.constant 1.000000e+00 : f32
    %131 = vector.broadcast %cst_29 : f32 to vector<8x128xf32>
    %132 = arith.addf %131, %130 : vector<8x128xf32>
    %133 = arith.divf %131, %132 : vector<8x128xf32>
    %134 = vector.extract_strided_slice %124 {offsets = [0, 128], sizes = [8, 128], strides = [1, 1]} : vector<8x384xf32> to vector<8x128xf32>
    %135 = vector.extract_strided_slice %125 {offsets = [0, 128], sizes = [8, 128], strides = [1, 1]} : vector<8x384xf32> to vector<8x128xf32>
    %136 = arith.addf %134, %135 : vector<8x128xf32>
    %137 = arith.negf %136 : vector<8x128xf32>
    %138 = math.exp %137 : vector<8x128xf32>
    %cst_30 = arith.constant 1.000000e+00 : f32
    %139 = vector.broadcast %cst_30 : f32 to vector<8x128xf32>
    %140 = arith.addf %139, %138 : vector<8x128xf32>
    %141 = arith.divf %139, %140 : vector<8x128xf32>
    %142 = vector.extract_strided_slice %124 {offsets = [0, 256], sizes = [8, 128], strides = [1, 1]} : vector<8x384xf32> to vector<8x128xf32>
    %143 = vector.extract_strided_slice %125 {offsets = [0, 256], sizes = [8, 128], strides = [1, 1]} : vector<8x384xf32> to vector<8x128xf32>
    %144 = vector.broadcast %5 : vector<1x128xf32> to vector<8x128xf32>
    %145 = arith.addf %143, %144 : vector<8x128xf32>
    %146 = arith.mulf %133, %145 : vector<8x128xf32>
    %147 = arith.addf %142, %146 : vector<8x128xf32>
    %148 = math.tanh %147 : vector<8x128xf32>
    %cst_31 = arith.constant 1.000000e+00 : f32
    %149 = vector.broadcast %cst_31 : f32 to vector<8x128xf32>
    %150 = arith.subf %149, %141 : vector<8x128xf32>
    %151 = arith.mulf %150, %148 : vector<8x128xf32>
    %152 = arith.mulf %141, %121 : vector<8x128xf32>
    %153 = arith.addf %151, %152 : vector<8x128xf32>
    %154 = arith.addi %6, %c3_i32 : i32
    %155 = vector.broadcast %154 : i32 to vector<8x1xi32>
    %156 = arith.cmpi sgt, %3, %155 : vector<8x1xi32>
    %157 = vector.shape_cast %156 : vector<8x1xi1> to vector<8x1xi1>
    %158 = vector.broadcast %157 : vector<8x1xi1> to vector<8x128xi1>
    %159 = arith.select %158, %153, %121 : vector<8x128xi1>, vector<8x128xf32>
    %c4_i32 = arith.constant 4 : i32
    %160 = arith.index_cast %c4_i32 : i32 to index
    %c0_32 = arith.constant 0 : index
    %c0_33 = arith.constant 0 : index
    %161 = vector.load %arg3[%160, %c0_32, %c0_33] : memref<8x8x384xf32, #tpu.memory_space<vmem>>, vector<1x8x384xf32>
    %162 = vector.shape_cast %161 : vector<1x8x384xf32> to vector<8x384xf32>
    %cst_34 = arith.constant dense<0.000000e+00> : vector<8x384xf32>
    %163 = tpu.matmul %159, %4, %cst_34 {dimension_numbers = #tpu.dot_dimension_numbers<[1], [0], [0], [1], [0, 0, 1, 1], [], []>} : vector<8x128xf32>, vector<128x384xf32>, vector<8x384xf32> -> vector<8x384xf32>
    %164 = vector.extract_strided_slice %162 {offsets = [0, 0], sizes = [8, 128], strides = [1, 1]} : vector<8x384xf32> to vector<8x128xf32>
    %165 = vector.extract_strided_slice %163 {offsets = [0, 0], sizes = [8, 128], strides = [1, 1]} : vector<8x384xf32> to vector<8x128xf32>
    %166 = arith.addf %164, %165 : vector<8x128xf32>
    %167 = arith.negf %166 : vector<8x128xf32>
    %168 = math.exp %167 : vector<8x128xf32>
    %cst_35 = arith.constant 1.000000e+00 : f32
    %169 = vector.broadcast %cst_35 : f32 to vector<8x128xf32>
    %170 = arith.addf %169, %168 : vector<8x128xf32>
    %171 = arith.divf %169, %170 : vector<8x128xf32>
    %172 = vector.extract_strided_slice %162 {offsets = [0, 128], sizes = [8, 128], strides = [1, 1]} : vector<8x384xf32> to vector<8x128xf32>
    %173 = vector.extract_strided_slice %163 {offsets = [0, 128], sizes = [8, 128], strides = [1, 1]} : vector<8x384xf32> to vector<8x128xf32>
    %174 = arith.addf %172, %173 : vector<8x128xf32>
    %175 = arith.negf %174 : vector<8x128xf32>
    %176 = math.exp %175 : vector<8x128xf32>
    %cst_36 = arith.constant 1.000000e+00 : f32
    %177 = vector.broadcast %cst_36 : f32 to vector<8x128xf32>
    %178 = arith.addf %177, %176 : vector<8x128xf32>
    %179 = arith.divf %177, %178 : vector<8x128xf32>
    %180 = vector.extract_strided_slice %162 {offsets = [0, 256], sizes = [8, 128], strides = [1, 1]} : vector<8x384xf32> to vector<8x128xf32>
    %181 = vector.extract_strided_slice %163 {offsets = [0, 256], sizes = [8, 128], strides = [1, 1]} : vector<8x384xf32> to vector<8x128xf32>
    %182 = vector.broadcast %5 : vector<1x128xf32> to vector<8x128xf32>
    %183 = arith.addf %181, %182 : vector<8x128xf32>
    %184 = arith.mulf %171, %183 : vector<8x128xf32>
    %185 = arith.addf %180, %184 : vector<8x128xf32>
    %186 = math.tanh %185 : vector<8x128xf32>
    %cst_37 = arith.constant 1.000000e+00 : f32
    %187 = vector.broadcast %cst_37 : f32 to vector<8x128xf32>
    %188 = arith.subf %187, %179 : vector<8x128xf32>
    %189 = arith.mulf %188, %186 : vector<8x128xf32>
    %190 = arith.mulf %179, %159 : vector<8x128xf32>
    %191 = arith.addf %189, %190 : vector<8x128xf32>
    %192 = arith.addi %6, %c4_i32 : i32
    %193 = vector.broadcast %192 : i32 to vector<8x1xi32>
    %194 = arith.cmpi sgt, %3, %193 : vector<8x1xi32>
    %195 = vector.shape_cast %194 : vector<8x1xi1> to vector<8x1xi1>
    %196 = vector.broadcast %195 : vector<8x1xi1> to vector<8x128xi1>
    %197 = arith.select %196, %191, %159 : vector<8x128xi1>, vector<8x128xf32>
    %c5_i32 = arith.constant 5 : i32
    %198 = arith.index_cast %c5_i32 : i32 to index
    %c0_38 = arith.constant 0 : index
    %c0_39 = arith.constant 0 : index
    %199 = vector.load %arg3[%198, %c0_38, %c0_39] : memref<8x8x384xf32, #tpu.memory_space<vmem>>, vector<1x8x384xf32>
    %200 = vector.shape_cast %199 : vector<1x8x384xf32> to vector<8x384xf32>
    %cst_40 = arith.constant dense<0.000000e+00> : vector<8x384xf32>
    %201 = tpu.matmul %197, %4, %cst_40 {dimension_numbers = #tpu.dot_dimension_numbers<[1], [0], [0], [1], [0, 0, 1, 1], [], []>} : vector<8x128xf32>, vector<128x384xf32>, vector<8x384xf32> -> vector<8x384xf32>
    %202 = vector.extract_strided_slice %200 {offsets = [0, 0], sizes = [8, 128], strides = [1, 1]} : vector<8x384xf32> to vector<8x128xf32>
    %203 = vector.extract_strided_slice %201 {offsets = [0, 0], sizes = [8, 128], strides = [1, 1]} : vector<8x384xf32> to vector<8x128xf32>
    %204 = arith.addf %202, %203 : vector<8x128xf32>
    %205 = arith.negf %204 : vector<8x128xf32>
    %206 = math.exp %205 : vector<8x128xf32>
    %cst_41 = arith.constant 1.000000e+00 : f32
    %207 = vector.broadcast %cst_41 : f32 to vector<8x128xf32>
    %208 = arith.addf %207, %206 : vector<8x128xf32>
    %209 = arith.divf %207, %208 : vector<8x128xf32>
    %210 = vector.extract_strided_slice %200 {offsets = [0, 128], sizes = [8, 128], strides = [1, 1]} : vector<8x384xf32> to vector<8x128xf32>
    %211 = vector.extract_strided_slice %201 {offsets = [0, 128], sizes = [8, 128], strides = [1, 1]} : vector<8x384xf32> to vector<8x128xf32>
    %212 = arith.addf %210, %211 : vector<8x128xf32>
    %213 = arith.negf %212 : vector<8x128xf32>
    %214 = math.exp %213 : vector<8x128xf32>
    %cst_42 = arith.constant 1.000000e+00 : f32
    %215 = vector.broadcast %cst_42 : f32 to vector<8x128xf32>
    %216 = arith.addf %215, %214 : vector<8x128xf32>
    %217 = arith.divf %215, %216 : vector<8x128xf32>
    %218 = vector.extract_strided_slice %200 {offsets = [0, 256], sizes = [8, 128], strides = [1, 1]} : vector<8x384xf32> to vector<8x128xf32>
    %219 = vector.extract_strided_slice %201 {offsets = [0, 256], sizes = [8, 128], strides = [1, 1]} : vector<8x384xf32> to vector<8x128xf32>
    %220 = vector.broadcast %5 : vector<1x128xf32> to vector<8x128xf32>
    %221 = arith.addf %219, %220 : vector<8x128xf32>
    %222 = arith.mulf %209, %221 : vector<8x128xf32>
    %223 = arith.addf %218, %222 : vector<8x128xf32>
    %224 = math.tanh %223 : vector<8x128xf32>
    %cst_43 = arith.constant 1.000000e+00 : f32
    %225 = vector.broadcast %cst_43 : f32 to vector<8x128xf32>
    %226 = arith.subf %225, %217 : vector<8x128xf32>
    %227 = arith.mulf %226, %224 : vector<8x128xf32>
    %228 = arith.mulf %217, %197 : vector<8x128xf32>
    %229 = arith.addf %227, %228 : vector<8x128xf32>
    %230 = arith.addi %6, %c5_i32 : i32
    %231 = vector.broadcast %230 : i32 to vector<8x1xi32>
    %232 = arith.cmpi sgt, %3, %231 : vector<8x1xi32>
    %233 = vector.shape_cast %232 : vector<8x1xi1> to vector<8x1xi1>
    %234 = vector.broadcast %233 : vector<8x1xi1> to vector<8x128xi1>
    %235 = arith.select %234, %229, %197 : vector<8x128xi1>, vector<8x128xf32>
    %c6_i32 = arith.constant 6 : i32
    %236 = arith.index_cast %c6_i32 : i32 to index
    %c0_44 = arith.constant 0 : index
    %c0_45 = arith.constant 0 : index
    %237 = vector.load %arg3[%236, %c0_44, %c0_45] : memref<8x8x384xf32, #tpu.memory_space<vmem>>, vector<1x8x384xf32>
    %238 = vector.shape_cast %237 : vector<1x8x384xf32> to vector<8x384xf32>
    %cst_46 = arith.constant dense<0.000000e+00> : vector<8x384xf32>
    %239 = tpu.matmul %235, %4, %cst_46 {dimension_numbers = #tpu.dot_dimension_numbers<[1], [0], [0], [1], [0, 0, 1, 1], [], []>} : vector<8x128xf32>, vector<128x384xf32>, vector<8x384xf32> -> vector<8x384xf32>
    %240 = vector.extract_strided_slice %238 {offsets = [0, 0], sizes = [8, 128], strides = [1, 1]} : vector<8x384xf32> to vector<8x128xf32>
    %241 = vector.extract_strided_slice %239 {offsets = [0, 0], sizes = [8, 128], strides = [1, 1]} : vector<8x384xf32> to vector<8x128xf32>
    %242 = arith.addf %240, %241 : vector<8x128xf32>
    %243 = arith.negf %242 : vector<8x128xf32>
    %244 = math.exp %243 : vector<8x128xf32>
    %cst_47 = arith.constant 1.000000e+00 : f32
    %245 = vector.broadcast %cst_47 : f32 to vector<8x128xf32>
    %246 = arith.addf %245, %244 : vector<8x128xf32>
    %247 = arith.divf %245, %246 : vector<8x128xf32>
    %248 = vector.extract_strided_slice %238 {offsets = [0, 128], sizes = [8, 128], strides = [1, 1]} : vector<8x384xf32> to vector<8x128xf32>
    %249 = vector.extract_strided_slice %239 {offsets = [0, 128], sizes = [8, 128], strides = [1, 1]} : vector<8x384xf32> to vector<8x128xf32>
    %250 = arith.addf %248, %249 : vector<8x128xf32>
    %251 = arith.negf %250 : vector<8x128xf32>
    %252 = math.exp %251 : vector<8x128xf32>
    %cst_48 = arith.constant 1.000000e+00 : f32
    %253 = vector.broadcast %cst_48 : f32 to vector<8x128xf32>
    %254 = arith.addf %253, %252 : vector<8x128xf32>
    %255 = arith.divf %253, %254 : vector<8x128xf32>
    %256 = vector.extract_strided_slice %238 {offsets = [0, 256], sizes = [8, 128], strides = [1, 1]} : vector<8x384xf32> to vector<8x128xf32>
    %257 = vector.extract_strided_slice %239 {offsets = [0, 256], sizes = [8, 128], strides = [1, 1]} : vector<8x384xf32> to vector<8x128xf32>
    %258 = vector.broadcast %5 : vector<1x128xf32> to vector<8x128xf32>
    %259 = arith.addf %257, %258 : vector<8x128xf32>
    %260 = arith.mulf %247, %259 : vector<8x128xf32>
    %261 = arith.addf %256, %260 : vector<8x128xf32>
    %262 = math.tanh %261 : vector<8x128xf32>
    %cst_49 = arith.constant 1.000000e+00 : f32
    %263 = vector.broadcast %cst_49 : f32 to vector<8x128xf32>
    %264 = arith.subf %263, %255 : vector<8x128xf32>
    %265 = arith.mulf %264, %262 : vector<8x128xf32>
    %266 = arith.mulf %255, %235 : vector<8x128xf32>
    %267 = arith.addf %265, %266 : vector<8x128xf32>
    %268 = arith.addi %6, %c6_i32 : i32
    %269 = vector.broadcast %268 : i32 to vector<8x1xi32>
    %270 = arith.cmpi sgt, %3, %269 : vector<8x1xi32>
    %271 = vector.shape_cast %270 : vector<8x1xi1> to vector<8x1xi1>
    %272 = vector.broadcast %271 : vector<8x1xi1> to vector<8x128xi1>
    %273 = arith.select %272, %267, %235 : vector<8x128xi1>, vector<8x128xf32>
    %c7_i32 = arith.constant 7 : i32
    %274 = arith.index_cast %c7_i32 : i32 to index
    %c0_50 = arith.constant 0 : index
    %c0_51 = arith.constant 0 : index
    %275 = vector.load %arg3[%274, %c0_50, %c0_51] : memref<8x8x384xf32, #tpu.memory_space<vmem>>, vector<1x8x384xf32>
    %276 = vector.shape_cast %275 : vector<1x8x384xf32> to vector<8x384xf32>
    %cst_52 = arith.constant dense<0.000000e+00> : vector<8x384xf32>
    %277 = tpu.matmul %273, %4, %cst_52 {dimension_numbers = #tpu.dot_dimension_numbers<[1], [0], [0], [1], [0, 0, 1, 1], [], []>} : vector<8x128xf32>, vector<128x384xf32>, vector<8x384xf32> -> vector<8x384xf32>
    %278 = vector.extract_strided_slice %276 {offsets = [0, 0], sizes = [8, 128], strides = [1, 1]} : vector<8x384xf32> to vector<8x128xf32>
    %279 = vector.extract_strided_slice %277 {offsets = [0, 0], sizes = [8, 128], strides = [1, 1]} : vector<8x384xf32> to vector<8x128xf32>
    %280 = arith.addf %278, %279 : vector<8x128xf32>
    %281 = arith.negf %280 : vector<8x128xf32>
    %282 = math.exp %281 : vector<8x128xf32>
    %cst_53 = arith.constant 1.000000e+00 : f32
    %283 = vector.broadcast %cst_53 : f32 to vector<8x128xf32>
    %284 = arith.addf %283, %282 : vector<8x128xf32>
    %285 = arith.divf %283, %284 : vector<8x128xf32>
    %286 = vector.extract_strided_slice %276 {offsets = [0, 128], sizes = [8, 128], strides = [1, 1]} : vector<8x384xf32> to vector<8x128xf32>
    %287 = vector.extract_strided_slice %277 {offsets = [0, 128], sizes = [8, 128], strides = [1, 1]} : vector<8x384xf32> to vector<8x128xf32>
    %288 = arith.addf %286, %287 : vector<8x128xf32>
    %289 = arith.negf %288 : vector<8x128xf32>
    %290 = math.exp %289 : vector<8x128xf32>
    %cst_54 = arith.constant 1.000000e+00 : f32
    %291 = vector.broadcast %cst_54 : f32 to vector<8x128xf32>
    %292 = arith.addf %291, %290 : vector<8x128xf32>
    %293 = arith.divf %291, %292 : vector<8x128xf32>
    %294 = vector.extract_strided_slice %276 {offsets = [0, 256], sizes = [8, 128], strides = [1, 1]} : vector<8x384xf32> to vector<8x128xf32>
    %295 = vector.extract_strided_slice %277 {offsets = [0, 256], sizes = [8, 128], strides = [1, 1]} : vector<8x384xf32> to vector<8x128xf32>
    %296 = vector.broadcast %5 : vector<1x128xf32> to vector<8x128xf32>
    %297 = arith.addf %295, %296 : vector<8x128xf32>
    %298 = arith.mulf %285, %297 : vector<8x128xf32>
    %299 = arith.addf %294, %298 : vector<8x128xf32>
    %300 = math.tanh %299 : vector<8x128xf32>
    %cst_55 = arith.constant 1.000000e+00 : f32
    %301 = vector.broadcast %cst_55 : f32 to vector<8x128xf32>
    %302 = arith.subf %301, %293 : vector<8x128xf32>
    %303 = arith.mulf %302, %300 : vector<8x128xf32>
    %304 = arith.mulf %293, %273 : vector<8x128xf32>
    %305 = arith.addf %303, %304 : vector<8x128xf32>
    %306 = arith.addi %6, %c7_i32 : i32
    %307 = vector.broadcast %306 : i32 to vector<8x1xi32>
    %308 = arith.cmpi sgt, %3, %307 : vector<8x1xi32>
    %309 = vector.shape_cast %308 : vector<8x1xi1> to vector<8x1xi1>
    %310 = vector.broadcast %309 : vector<8x1xi1> to vector<8x128xi1>
    %311 = arith.select %310, %305, %273 : vector<8x128xi1>, vector<8x128xf32>
    %c8_i32_56 = arith.constant 8 : i32
    %c0_57 = arith.constant 0 : index
    %c0_58 = arith.constant 0 : index
    %312 = vector.load %arg6[%c0_57, %c0_58] : memref<8x128xf32, #tpu.memory_space<vmem>>, vector<8x128xf32>
    tpu.vector_store %arg6[%c0_57, %c0_58], %311 {strides = array<i32>} : memref<8x128xf32, #tpu.memory_space<vmem>>, vector<8x128xf32>,
    return
  }
  func.func @transform_0(%arg0: i32, %arg1: i32) -> (i32, i32) {
    %c0_i32 = arith.constant 0 : i32
    %c0_i32_0 = arith.constant 0 : i32
    return %arg0, %c0_i32 : i32, i32
  }
  func.func @transform_1(%arg0: i32, %arg1: i32) -> (i32, i32, i32) {
    %c0_i32 = arith.constant 0 : i32
    %c0_i32_0 = arith.constant 0 : i32
    return %arg1, %arg0, %c0_i32 : i32, i32, i32
  }
  func.func @transform_2(%arg0: i32, %arg1: i32) -> (i32, i32) {
    %c0_i32 = arith.constant 0 : i32
    %c0_i32_0 = arith.constant 0 : i32
    %c0_i32_1 = arith.constant 0 : i32
    return %c0_i32, %c0_i32_0 : i32, i32
  }
  func.func @transform_3(%arg0: i32, %arg1: i32) -> (i32, i32) {
    %c0_i32 = arith.constant 0 : i32
    %c0_i32_0 = arith.constant 0 : i32
    %c0_i32_1 = arith.constant 0 : i32
    return %c0_i32, %c0_i32_0 : i32, i32
  }
  func.func @transform_4(%arg0: i32, %arg1: i32) -> (i32, i32) {
    %c0_i32 = arith.constant 0 : i32
    %c0_i32_0 = arith.constant 0 : i32
    return %arg0, %c0_i32 : i32, i32
  }
}

</mosaic_0001>

<bundles_post_ra>
// kernel: tpu_custom_call.1
= control target key start
LH: loop header
LB: loop body
LE: loop exit
PB: predicated region body
PF: predicated region fallthrough
CT: control target
= control target key end

     0   :  { %9 = vsyncpa [#allocation3], 0  ;;  %s3019_s0 = inlined_call_operand.vmem [shape: s32[8,1], index: 0, kind: input, shape index: {}]   ;;  %s3020_s1 = inlined_call_operand.hbm [shape: f32[8,8,384], index: 1, kind: input, shape index: {}]   ;;  %s3021_s2 = inlined_call_operand.hbm [shape: f32[128,384], index: 2, kind: input, shape index: {}]   ;;  %s3022_s3 = inlined_call_operand.vmem [shape: f32[1,128], index: 3, kind: input, shape index: {}]   ;;  %s3023_s4 = inlined_call_operand.hbm [shape: f32[8,128], index: 4, kind: output, shape index: {}]  }
   0x1   :  { %10 = vsyncpa [#allocation6], 0 }
   0x2   :  { %11 = vsyncpa [#allocation4], 0  ;;  %s2172_s15 = smov [#allocation2]  }
   0x3   :  { %s19_s16 = sshll.u32 %s2172_s15, 4  ;;  %s20_s16 = int_to_ptr.vmem [resolvable:$true] %s19_s16 }
   0x4   :  { %s2114_s17 = scalar_lea.vmem %s20_s16, 3072  ;;  %p2119_p1 = scmp.lt.s32.totalorder %s20_s16, %s20_s16 }
   0x5   :  { %p2115_p0 = scmp.ne.s32.totalorder %s20_s16, %s2114_s17  ;;  %p2120_p2 = scmp.lt.s32.totalorder %s2114_s17, %s2114_s17 }
   0x7   :  { %p2121_p3 = por %p2120_p2, %p2119_p1 }
   0x9   :  { %p2122_p4 = pnand %p2121_p3, %p2115_p0 }
   0xb   :  { %2125 = shalt.err (!%p2122_p4)
}
   0xc   :  { %s2173_s18 = smov 384   ;;  %s2174_s19 = smov 24  }
   0xd   :  { %25 = dma.hbm_to_vmem [thread:$0]  %s3020_s1, 3072, %s20_s16, [#allocation3], %s2173_s18, %s2173_s18, %s2174_s19  }
   0xe   :  { %s2175_s22 = smov [#allocation5]  }
   0xf   :  { %s31_s23 = sshll.u32 %s2175_s22, 4  ;;  %s32_s23 = int_to_ptr.vmem [resolvable:$true] %s31_s23 }
  0x10   :  { %s2134_s24 = scalar_lea.vmem %s32_s23, 6144  ;;  %p2139_p6 = scmp.lt.s32.totalorder %s32_s23, %s32_s23 }
  0x11   :  { %p2135_p5 = scmp.ne.s32.totalorder %s32_s23, %s2134_s24  ;;  %p2140_p7 = scmp.lt.s32.totalorder %s2134_s24, %s2134_s24 }
  0x13   :  { %p2141_p8 = por %p2140_p7, %p2139_p6 }
  0x15   :  { %p2142_p9 = pnand %p2141_p8, %p2135_p5 }
  0x17   :  { %2145 = shalt.err (!%p2142_p9)
}
  0x18   :  { %37 = dma.hbm_to_vmem [thread:$0]  %s3021_s2, 6144, %s32_s23, [#allocation6], %s2173_s18, %s2173_s18, %s2174_s19  }
  0x19   :  { %2166 = dma.done.wait [#allocation3], 3072  }
  0x1a   :  { %2167 = vsyncadd [#allocation3], 4294964224 }
  0x1b   :  { %2168 = dma.done.wait [#allocation6], 6144  }
  0x1c   :  { %2169 = vsyncadd [#allocation6], 4294961152  ;;  %v3026_v0 = vmov 0.0   ;;  %vm2177_vm0 = vmmov 0   ;;  %v3024_v1 = vmov 0   ;;  %v2217_v2 = vld [vmem:[#allocation5 + $0x170] sm:$0xff] }
  0x1d   :  { %1685 = vmatprep.subr.mxu1 %v3026_v0  ;;  %170 = vmatprep.mubr.f32.mxu0 %v3026_v0  ;;  %3041 = vst [vmem:[#allocation11_spill] sm:$0xff] %v2217_v2  ;;  %v2219_v3 = vld [vmem:[#allocation5 + $0x168] sm:$0xff]  ;;  %v2221_v4 = vld [vmem:[#allocation5 + $0x158] sm:$0xff]  ;;  %v2224_v5 = vld [vmem:[#allocation5 + $0x150] sm:$0xff] }
  0x1e   :  { %1717 = vmatprep.mubr.msk.f32.mxu1 %vm2177_vm0, %v3026_v0  ;;  %1973 = vset.pattern.permute.xlu0 %v3024_v1  ;;  %v2227_v6 = vld [vmem:[#allocation5 + $0x140] sm:$0xff]  ;;  %v2230_v7 = vld [vmem:[#allocation5 + $0x138] sm:$0xff]  ;;  %v2233_v8 = vld [vmem:[#allocation5 + $0x128] sm:$0xff] }
  0x1f   :  { %1974 = vset.pattern.permute.xlu1 %v3024_v1  ;;  %106 = vmatprep.subr.mxu0 %v2217_v2  ;;  %v2236_v9 = vld [vmem:[#allocation5 + $0x120] sm:$0xff]  ;;  %v2239_v10 = vld [vmem:[#allocation5 + $0x110] sm:$0xff]  ;;  %v2242_v11 = vld [vmem:[#allocation5 + $0x108] sm:$0xff] }
  0x20   :  { %107 = vmatpush1.msra.mxu0 %v2219_v3  ;;  %v2245_v12 = vld [vmem:[#allocation5 + $0xf8] sm:$0xff]  ;;  %v2248_v13 = vld [vmem:[#allocation5 + $0xf0] sm:$0xff]  ;;  %v2251_v14 = vld [vmem:[#allocation5 + $0xe0] sm:$0xff] }
  0x21   :  { %108 = vmatprep.subr.mxu0 %v2221_v4  ;;  %v2253_v15 = vld [vmem:[#allocation5 + $0x178] sm:$0xff]  ;;  %v2259_v17 = vld [vmem:[#allocation5 + $0x160] sm:$0xff]  ;;  %v2262_v18 = vld [vmem:[#allocation5 + $0xc8] sm:$0xff] }
  0x22   :  { %109 = vmatpush1.msra.mxu0 %v2224_v5  ;;  %v2256_v16 = vld [vmem:[#allocation5 + $0xd8] sm:$0xff]  ;;  %1686 = vmatpush3.msra.mxu1 %v2253_v15  ;;  %v2265_v19 = vld [vmem:[#allocation5 + $0x148] sm:$0xff]  ;;  %v2268_v20 = vld [vmem:[#allocation5 + $0xc0] sm:$0xff] }
  0x23   :  { %110 = vmatprep.subr.mxu0 %v2227_v6  ;;  %1687 = vmatprep.subr.mxu1 %v3026_v0  ;;  %v2272_v21 = vld [vmem:[#allocation5 + $0xb0] sm:$0xff]  ;;  %v2278_v23 = vld [vmem:[#allocation5 + $0xa8] sm:$0xff]  ;;  %v2282_v24 = vld [vmem:[#allocation5 + $0x98] sm:$0xff] }
  0x24   :  { %111 = vmatpush1.msra.mxu0 %v2230_v7  ;;  %1688 = vmatpush3.msra.mxu1 %v2259_v17  ;;  %v2275_v22 = vld [vmem:[#allocation5 + $0x130] sm:$0xff]  ;;  %v2285_v25 = vld [vmem:[#allocation5 + $0x118] sm:$0xff]  ;;  %v2292_v27 = vld [vmem:[#allocation5 + $0x80] sm:$0xff] }
  0x25   :  { %112 = vmatprep.subr.mxu0 %v2233_v8  ;;  %1689 = vmatprep.subr.mxu1 %v3026_v0  ;;  %v2288_v26 = vld [vmem:[#allocation5 + $0x90] sm:$0xff]  ;;  %v2295_v28 = vld [vmem:[#allocation5 + $0x100] sm:$0xff]  ;;  %v2298_v29 = vld [vmem:[#allocation5 + $0x78] sm:$0xff] }
  0x26   :  { %113 = vmatpush1.msra.mxu0 %v2236_v9  ;;  %1690 = vmatpush3.msra.mxu1 %v2265_v19  ;;  %v2302_v30 = vld [vmem:[#allocation5 + $0x68] sm:$0xff]  ;;  %v2308_v32 = vld [vmem:[#allocation5 + $0x60] sm:$0xff]  ;;  %v2312_v33 = vld [vmem:[#allocation5 + $0x50] sm:$0xff] }
  0x27   :  { %114 = vmatprep.subr.mxu0 %v2239_v10  ;;  %1691 = vmatprep.subr.mxu1 %v3026_v0  ;;  %v2305_v31 = vld [vmem:[#allocation5 + $0xe8] sm:$0xff]  ;;  %v2315_v34 = vld [vmem:[#allocation5 + $0xd0] sm:$0xff]  ;;  %v2322_v36 = vld [vmem:[#allocation5 + $0x38] sm:$0xff] }
  0x28   :  { %115 = vmatpush1.msra.mxu0 %v2242_v11  ;;  %1692 = vmatpush3.msra.mxu1 %v2275_v22  ;;  %v2318_v35 = vld [vmem:[#allocation5 + $0x48] sm:$0xff]  ;;  %v2325_v37 = vld [vmem:[#allocation5 + $0xb8] sm:$0xff]  ;;  %v2328_v38 = vld [vmem:[#allocation5 + $0x30] sm:$0xff] }
  0x29   :  { %116 = vmatprep.subr.mxu0 %v2245_v12  ;;  %1693 = vmatprep.subr.mxu1 %v3026_v0  ;;  %v2334_v39 = vld [vmem:[%s3019_s0] sm:$0xff]  ;;  %v2343_v42 = vld [vmem:[#allocation5 + $0x18] sm:$0xff]  ;;  %v2347_v43 = vld [vmem:[#allocation5 + $0x8] sm:$0xff] }
  0x2a   :  { %117 = vmatpush1.msra.mxu0 %v2248_v13  ;;  %1694 = vmatpush3.msra.mxu1 %v2285_v25  ;;  %3042 = vst [vmem:[#allocation12_spill] sm:$0xff] %v2334_v39  ;;  %v2337_v40 = vld [vmem:[#allocation5 + $0x20] sm:$0xff]  ;;  %3043 = vst [vmem:[#allocation13_spill] sm:$0xff] %v2347_v43  ;;  %v2350_v44 = vld [vmem:[#allocation5 + $0x88] sm:$0xff]  ;;  %vm276_vm1 = vcmp.gt.s32.totalorder %v2334_v39, 0  ;;  %vm452_vm2 = vcmp.gt.s32.totalorder %v2334_v39, 1 }
  0x2b   :  { %118 = vmatprep.subr.mxu0 %v2251_v14  ;;  %1695 = vmatprep.subr.mxu1 %v3026_v0  ;;  %v2340_v41 = vld [vmem:[#allocation5 + $0xa0] sm:$0xff]  ;;  %v2359_v46 = vld [vmem:[#allocation5 + $0x70] sm:$0xff]  ;;  %v277_v47 = vsel %vm276_vm1, 1, %v3024_v1  ;;  %v2366_v48 = vld [vmem:[#allocation5 + $0x58] sm:$0xff]  ;;  %v453_v50 = vsel %vm452_vm2, 1, %v3024_v1  ;;  %vm980_vm3 = vcmp.gt.s32.totalorder %v2334_v39, 4 }
  0x2c   :  { %119 = vmatpush1.msra.mxu0 %v2256_v16  ;;  %1696 = vmatpush3.msra.mxu1 %v2295_v28  ;;  %v2354_v45 = vld [vmem:[#allocation5] sm:$0xff]  ;;  %v2378_v51 = vld [vmem:[#allocation5 + $0x28] sm:$0xff]  ;;  %v2385_v52 = vld [vmem:[#allocation5 + $0x10] sm:$0xff]  ;;  %v981_v53 = vsel %vm980_vm3, 1, %v3024_v1  ;;  %vm1332_vm4 = vcmp.gt.s32.totalorder %v2334_v39, 6 }
  0x2d   :  { %120 = vmatprep.subr.mxu0 %v2262_v18  ;;  %1697 = vmatprep.subr.mxu1 %v3026_v0  ;;  %3044 = vst [vmem:[#allocation14_spill] sm:$0xff] %v2354_v45  ;;  %v2372_v49 = vld [vmem:[#allocation5 + $0x40] sm:$0xff]  ;;  %3045 = vst [vmem:[#allocation15_spill] sm:$0xff] %v2378_v51  ;;  %v1333_v54 = vsel %vm1332_vm4, 1, %v3024_v1  ;;  %v104_v59 = vld [vmem:[#allocation2 + $0x8] sm:$0xff] }
  0x2e   :  { %121 = vmatpush1.msra.mxu0 %v2268_v20  ;;  %1698 = vmatpush3.msra.mxu1 %v2305_v31  ;;  %3046 = vst [vmem:[#allocation16_spill] sm:$0xff] %v2385_v52  ;;  %v103_v55 = vld [vmem:[#allocation2] sm:$0xff] }
  0x2f   :  { %122 = vmatprep.subr.mxu0 %v2272_v21  ;;  %1699 = vmatprep.subr.mxu1 %v3026_v0  ;;  %v2463_v1 = vld [vmem:[%s3022_s3] ss:$0 sm:$0xff] }
  0x30   :  { %123 = vmatpush1.msra.mxu0 %v2278_v23  ;;  %1700 = vmatpush3.msra.mxu1 %v2315_v34 }
  0x31   :  { %124 = vmatprep.subr.mxu0 %v2282_v24  ;;  %1701 = vmatprep.subr.mxu1 %v3026_v0 }
  0x32   :  { %125 = vmatpush1.msra.mxu0 %v2288_v26  ;;  %1702 = vmatpush3.msra.mxu1 %v2325_v37 }
  0x33   :  { %126 = vmatprep.subr.mxu0 %v2292_v27  ;;  %1703 = vmatprep.subr.mxu1 %v3026_v0 }
  0x34   :  { %127 = vmatpush1.msra.mxu0 %v2298_v29  ;;  %1704 = vmatpush3.msra.mxu1 %v2340_v41 }
  0x35   :  { %128 = vmatprep.subr.mxu0 %v2302_v30  ;;  %1705 = vmatprep.subr.mxu1 %v3026_v0 }
  0x36   :  { %129 = vmatpush1.msra.mxu0 %v2308_v32  ;;  %1706 = vmatpush3.msra.mxu1 %v2350_v44 }
  0x37   :  { %130 = vmatprep.subr.mxu0 %v2312_v33  ;;  %1707 = vmatprep.subr.mxu1 %v3026_v0 }
  0x38   :  { %131 = vmatpush1.msra.mxu0 %v2318_v35  ;;  %1708 = vmatpush3.msra.mxu1 %v2359_v46 }
  0x39   :  { %132 = vmatprep.subr.mxu0 %v2322_v36  ;;  %1709 = vmatprep.subr.mxu1 %v3026_v0 }
  0x3a   :  { %133 = vmatpush1.msra.mxu0 %v2328_v38  ;;  %279 = vperm.xlu0 %1973, %v277_v47  }
  0x3b   :  { %134 = vmatprep.subr.mxu0 %v2337_v40  ;;  %1710 = vmatpush3.msra.mxu1 %v2366_v48 }
  0x3c   :  { %135 = vmatpush1.msra.mxu0 %v2343_v42  ;;  %1711 = vmatprep.subr.mxu1 %v3026_v0 }
  0x3d   :  { %136 = vmatprep.subr.mxu0 %v2347_v43  ;;  %1712 = vmatpush3.msra.mxu1 %v2372_v49 }
  0x3e   :  { %137 = vmatpush1.msra.mxu0 %v2354_v45  ;;  %1713 = vmatprep.subr.mxu1 %v3026_v0 }
  0x3f   :  { %171 = vmatmul.mubr.f32.vlgmr.msra.gmra.mxu0 %v3026_v0  ;;  %287 = vmatprep.subr.mxu0 %v2217_v2 }
  0x40   :  { %288 = vmatpush1.msra.mxu0 %v2219_v3  ;;  %455 = vperm.xlu0 %1973, %v453_v50  }
  0x41   :  { %289 = vmatprep.subr.mxu0 %v2221_v4  ;;  %1714 = vmatpush3.msra.mxu1 %v2378_v51 }
  0x42   :  { %290 = vmatpush1.msra.mxu0 %v2224_v5  ;;  %1715 = vmatprep.subr.mxu1 %v3026_v0 }
  0x43   :  { %291 = vmatprep.subr.mxu0 %v2227_v6  ;;  %1716 = vmatpush3.msra.mxu1 %v2385_v52 }
  0x44   :  { %292 = vmatpush1.msra.mxu0 %v2230_v7  ;;  %1718 = vmatmul.mubr.f32.vlgmr.msra.gmra.mxu1 %v3026_v0 }
  0x45   :  { %983 = vperm.xlu0 %1973, %v981_v53   ;;  %1720 = vmatprep.subr.mxu1 %v3026_v0 }
  0x46   :  { %293 = vmatprep.subr.mxu0 %v2233_v8  ;;  %1721 = vmatpush3.msra.mxu1 %v2253_v15 }
  0x47   :  { %294 = vmatpush1.msra.mxu0 %v2236_v9  ;;  %1722 = vmatprep.subr.mxu1 %v3026_v0 }
  0x48   :  { %295 = vmatprep.subr.mxu0 %v2239_v10  ;;  %1723 = vmatpush3.msra.mxu1 %v2259_v17 }
  0x49   :  { %1335 = vperm.xlu0 %1973, %v1333_v54   ;;  %1724 = vmatprep.subr.mxu1 %v3026_v0 }
  0x4a   :  { %296 = vmatpush1.msra.mxu0 %v2242_v11  ;;  %1725 = vmatpush3.msra.mxu1 %v2265_v19 }
  0x4b   :  { %297 = vmatprep.subr.mxu0 %v2245_v12  ;;  %1726 = vmatprep.subr.mxu1 %v3026_v0 }
  0x4c   :  { %298 = vmatpush1.msra.mxu0 %v2248_v13  ;;  %1727 = vmatpush3.msra.mxu1 %v2275_v22 }
  0x4d   :  { %299 = vmatprep.subr.mxu0 %v2251_v14  ;;  %1728 = vmatprep.subr.mxu1 %v3026_v0 }
  0x4e   :  { %300 = vmatpush1.msra.mxu0 %v2256_v16  ;;  %1729 = vmatpush3.msra.mxu1 %v2285_v25 }
  0x4f   :  { %301 = vmatprep.subr.mxu0 %v2262_v18  ;;  %1730 = vmatprep.subr.mxu1 %v3026_v0 }
  0x50   :  { %302 = vmatpush1.msra.mxu0 %v2268_v20  ;;  %1731 = vmatpush3.msra.mxu1 %v2295_v28 }
  0x51   :  { %303 = vmatprep.subr.mxu0 %v2272_v21  ;;  %1732 = vmatprep.subr.mxu1 %v3026_v0 }
  0x52   :  { %304 = vmatpush1.msra.mxu0 %v2278_v23  ;;  %1733 = vmatpush3.msra.mxu1 %v2305_v31 }
  0x53   :  { %305 = vmatprep.subr.mxu0 %v2282_v24  ;;  %1734 = vmatprep.subr.mxu1 %v3026_v0 }
  0x54   :  { %306 = vmatpush1.msra.mxu0 %v2288_v26  ;;  %1735 = vmatpush3.msra.mxu1 %v2315_v34 }
  0x55   :  { %307 = vmatprep.subr.mxu0 %v2292_v27  ;;  %1736 = vmatprep.subr.mxu1 %v3026_v0 }
  0x56   :  { %308 = vmatpush1.msra.mxu0 %v2298_v29  ;;  %1737 = vmatpush3.msra.mxu1 %v2325_v37 }
  0x57   :  { %309 = vmatprep.subr.mxu0 %v2302_v30  ;;  %1738 = vmatprep.subr.mxu1 %v3026_v0 }
  0x58   :  { %310 = vmatpush1.msra.mxu0 %v2308_v32  ;;  %1739 = vmatpush3.msra.mxu1 %v2340_v41 }
  0x59   :  { %311 = vmatprep.subr.mxu0 %v2312_v33  ;;  %1740 = vmatprep.subr.mxu1 %v3026_v0 }
  0x5a   :  { %312 = vmatpush1.msra.mxu0 %v2318_v35  ;;  %1741 = vmatpush3.msra.mxu1 %v2350_v44 }
  0x5b   :  { %313 = vmatprep.subr.mxu0 %v2322_v36  ;;  %1742 = vmatprep.subr.mxu1 %v3026_v0 }
  0x5c   :  { %314 = vmatpush1.msra.mxu0 %v2328_v38  ;;  %1743 = vmatpush3.msra.mxu1 %v2359_v46 }
  0x5d   :  { %315 = vmatprep.subr.mxu0 %v2337_v40  ;;  %1744 = vmatprep.subr.mxu1 %v3026_v0 }
  0x5e   :  { %316 = vmatpush1.msra.mxu0 %v2343_v42  ;;  %1745 = vmatpush3.msra.mxu1 %v2366_v48 }
  0x5f   :  { %317 = vmatprep.subr.mxu0 %v2347_v43  ;;  %1746 = vmatprep.subr.mxu1 %v3026_v0 }
  0x60   :  { %318 = vmatpush1.msra.mxu0 %v2354_v45  ;;  %1747 = vmatpush3.msra.mxu1 %v2372_v49 }
  0x61   :  { %351 = vmatprep.mubr.f32.mxu0 %v3026_v0  ;;  %1748 = vmatprep.subr.mxu1 %v3026_v0 }
  0x62   :  { %1752 = vmatprep.mubr.msk.f32.mxu1 %vm2177_vm0, %v3026_v0  ;;  %1749 = vmatpush3.msra.mxu1 %v2378_v51 }
  0x63   :  { %463 = vmatprep.subr.mxu0 %v2217_v2  ;;  %1750 = vmatprep.subr.mxu1 %v3026_v0 }
  0x64   :  { %1751 = vmatpush3.msra.mxu1 %v2385_v52 }
  0x65   :  { %1755 = vmatprep.subr.mxu1 %v3026_v0 }
  0xff   :  { %v172_v56 = vpop.f32.mrf.mxu0 }
 0x100   :  { %v247_v57 = vadd.f32 %v172_v56, %v103_v55 }
 0x101   :  { %v174_v60 = vpop.f32.mrf.mxu0 }
 0x102   :  { %v1532_v58 = vmul.f32 -1.442695, %v247_v57  ;;  %v254_v61 = vadd.f32 %v174_v60, %v104_v59  ;;  %v105_v57 = vld [vmem:[#allocation2 + $0x10] sm:$0xff] }
 0x104   :  { %1975 = vpow2.f32 %v1532_v58  ;;  %v243_v62 = vpop.f32.mrf.mxu1  ;;  %v1533_v63 = vmul.f32 -1.442695, %v254_v61 }
 0x105   :  { %v267_v55 = vadd.f32 %v2463_v1, %v243_v62  ;;  %v3049_v62 = vld [vmem:[#allocation12_spill] sm:$0xff] }
 0x106   :  { %v1719_v47 = vpop.f32.mrf.mxu1  ;;  %1977 = vpow2.f32 %v1533_v63  ;;  %vm628_vm6 = vcmp.gt.s32.totalorder %v3049_v62, 2  ;;  %vm804_vm7 = vcmp.gt.s32.totalorder %v3049_v62, 3  ;;  %vm1156_vm8 = vcmp.gt.s32.totalorder %v3049_v62, 5 }
 0x107   :  { %v280_v47 = vpop.permute.xlu0 %279  ;;  %vm1508_vm9 = vcmp.gt.s32.totalorder %v3049_v62, 7 }
 0x108   :  { %vm281_vm5 = vcmp.eq.s32.totalorder %v280_v47, 1 }
 0x111   :  { %v1976_v50 = vpop.eup %1975 }
 0x112   :  { %v251_v53 = vadd.f32 1.0, %v1976_v50 }
 0x113   :  { %v1978_v54 = vpop.eup %1977 }
 0x114   :  { %1979 = vrcp.f32 %v251_v53  ;;  %v258_v0 = vadd.f32 1.0, %v1978_v54  ;;  %v3050_v54 = vmov 0  }
 0x116   :  { %1981 = vrcp.f32 %v258_v0  ;;  %v3047_v0 = vmov 0.0  }
 0x121   :  { %v1980_v56 = vpop.eup %1979 }
 0x122   :  { %v268_v58 = vmul.f32 %v1980_v56, %v267_v55  ;;  %v629_v55 = vsel %vm628_vm6, 1, %v3050_v54  ;;  %v805_v56 = vsel %vm804_vm7, 1, %v3050_v54 }
 0x123   :  { %v1982_v60 = vpop.eup %1981  ;;  %631 = vperm.xlu1 %1974, %v629_v55  }
 0x124   :  { %v269_v59 = vadd.f32 %v268_v58, %v105_v57  ;;  %v271_v61 = vsub.f32 1.0, %v1982_v60  ;;  %v273_v53 = vmul.f32 0.0, %v1982_v60  ;;  %v1157_v57 = vsel %vm1156_vm8, 1, %v3050_v54 }
 0x125   :  { %v1509_v58 = vsel %vm1508_vm9, 1, %v3050_v54 }
 0x126   :  { %1983 = vtanh.f32 %v269_v59  ;;  %v284_v59 = vld [vmem:[#allocation2 + $0x18] sm:$0xff] }
 0x127   :  { %807 = vperm.xlu1 %1974, %v805_v56  }
 0x12b   :  { %1159 = vperm.xlu1 %1974, %v1157_v57  }
 0x12f   :  { %1511 = vperm.xlu1 %1974, %v1509_v58  }
 0x133   :  { %v1984_v63 = vpop.eup %1983 }
 0x134   :  { %v272_v50 = vmul.f32 %v1984_v63, %v271_v61 }
 0x136   :  { %v274_v39 = vadd.f32 %v273_v53, %v272_v50  ;;  %v285_v53 = vld [vmem:[#allocation2 + $0x20] sm:$0xff] }
 0x138   :  { %v2466_v2 = vsel %vm281_vm5, %v274_v39, 0.0  ;;  %2104 = vmatmul.mubr.msk.f32.vlgmr.msra.gmra.mxu0 %vm281_vm5, %v274_v39  ;;  %2105 = vmatmul.mubr.msk.f32.vlgmr.msra.gmra.mxu1 %vm281_vm5, %v274_v39  ;;  %v3048_v39 = vld [vmem:[#allocation11_spill] sm:$0xff] }
 0x139   :  { %464 = vmatpush1.msra.mxu0 %v2219_v3  ;;  %1756 = vmatpush3.msra.mxu1 %v2253_v15 }
 0x13a   :  { %465 = vmatprep.subr.mxu0 %v2221_v4  ;;  %1757 = vmatprep.subr.mxu1 %v3047_v0 }
 0x13b   :  { %466 = vmatpush1.msra.mxu0 %v2224_v5  ;;  %1758 = vmatpush3.msra.mxu1 %v2259_v17 }
 0x13c   :  { %467 = vmatprep.subr.mxu0 %v2227_v6  ;;  %1759 = vmatprep.subr.mxu1 %v3047_v0 }
 0x13d   :  { %468 = vmatpush1.msra.mxu0 %v2230_v7  ;;  %1760 = vmatpush3.msra.mxu1 %v2265_v19 }
 0x13e   :  { %469 = vmatprep.subr.mxu0 %v2233_v8  ;;  %1761 = vmatprep.subr.mxu1 %v3047_v0 }
 0x13f   :  { %470 = vmatpush1.msra.mxu0 %v2236_v9  ;;  %1762 = vmatpush3.msra.mxu1 %v2275_v22 }
 0x140   :  { %471 = vmatprep.subr.mxu0 %v2239_v10  ;;  %1763 = vmatprep.subr.mxu1 %v3047_v0 }
 0x141   :  { %472 = vmatpush1.msra.mxu0 %v2242_v11  ;;  %1764 = vmatpush3.msra.mxu1 %v2285_v25 }
 0x142   :  { %473 = vmatprep.subr.mxu0 %v2245_v12  ;;  %1765 = vmatprep.subr.mxu1 %v3047_v0 }
 0x143   :  { %474 = vmatpush1.msra.mxu0 %v2248_v13  ;;  %1766 = vmatpush3.msra.mxu1 %v2295_v28 }
 0x144   :  { %475 = vmatprep.subr.mxu0 %v2251_v14  ;;  %1767 = vmatprep.subr.mxu1 %v3047_v0 }
 0x145   :  { %476 = vmatpush1.msra.mxu0 %v2256_v16  ;;  %1768 = vmatpush3.msra.mxu1 %v2305_v31 }
 0x146   :  { %477 = vmatprep.subr.mxu0 %v2262_v18  ;;  %1769 = vmatprep.subr.mxu1 %v3047_v0 }
 0x147   :  { %478 = vmatpush1.msra.mxu0 %v2268_v20  ;;  %1770 = vmatpush3.msra.mxu1 %v2315_v34 }
 0x148   :  { %479 = vmatprep.subr.mxu0 %v2272_v21  ;;  %1771 = vmatprep.subr.mxu1 %v3047_v0 }
 0x149   :  { %480 = vmatpush1.msra.mxu0 %v2278_v23  ;;  %1772 = vmatpush3.msra.mxu1 %v2325_v37 }
 0x14a   :  { %481 = vmatprep.subr.mxu0 %v2282_v24  ;;  %1773 = vmatprep.subr.mxu1 %v3047_v0 }
 0x14b   :  { %482 = vmatpush1.msra.mxu0 %v2288_v26  ;;  %1774 = vmatpush3.msra.mxu1 %v2340_v41 }
 0x14c   :  { %483 = vmatprep.subr.mxu0 %v2292_v27  ;;  %1775 = vmatprep.subr.mxu1 %v3047_v0 }
 0x14d   :  { %484 = vmatpush1.msra.mxu0 %v2298_v29  ;;  %1776 = vmatpush3.msra.mxu1 %v2350_v44 }
 0x14e   :  { %485 = vmatprep.subr.mxu0 %v2302_v30  ;;  %1777 = vmatprep.subr.mxu1 %v3047_v0 }
 0x14f   :  { %486 = vmatpush1.msra.mxu0 %v2308_v32  ;;  %1778 = vmatpush3.msra.mxu1 %v2359_v46 }
 0x150   :  { %487 = vmatprep.subr.mxu0 %v2312_v33  ;;  %1779 = vmatprep.subr.mxu1 %v3047_v0 }
 0x151   :  { %488 = vmatpush1.msra.mxu0 %v2318_v35  ;;  %1780 = vmatpush3.msra.mxu1 %v2366_v48 }
 0x152   :  { %489 = vmatprep.subr.mxu0 %v2322_v36  ;;  %1781 = vmatprep.subr.mxu1 %v3047_v0 }
 0x153   :  { %490 = vmatpush1.msra.mxu0 %v2328_v38  ;;  %1782 = vmatpush3.msra.mxu1 %v2372_v49 }
 0x154   :  { %491 = vmatprep.subr.mxu0 %v2337_v40  ;;  %1783 = vmatprep.subr.mxu1 %v3047_v0 }
 0x155   :  { %492 = vmatpush1.msra.mxu0 %v2343_v42  ;;  %1784 = vmatpush3.msra.mxu1 %v2378_v51 }
 0x156   :  { %493 = vmatprep.subr.mxu0 %v2347_v43  ;;  %1785 = vmatprep.subr.mxu1 %v3047_v0  ;;  %v286_v43 = vld [vmem:[#allocation2 + $0x28] sm:$0xff] }
 0x157   :  { %494 = vmatpush1.msra.mxu0 %v2354_v45  ;;  %527 = vmatprep.mubr.f32.mxu0 %v3047_v0 }
 0x158   :  { %1786 = vmatpush3.msra.mxu1 %v2385_v52  ;;  %1787 = vmatprep.mubr.msk.f32.mxu1 %vm2177_vm0, %v3047_v0 }
 0x159   :  { %639 = vmatprep.subr.mxu0 %v3048_v39  ;;  %1790 = vmatprep.subr.mxu1 %v3047_v0 }
 0x1f8   :  { %v353_v60 = vpop.f32.mrf.mxu0  ;;  %v424_v61 = vpop.f32.mrf.mxu1 }
 0x1f9   :  { %v428_v63 = vadd.f32 %v353_v60, %v284_v59  ;;  %v442_v54 = vadd.f32 %v2463_v1, %v424_v61  ;;  %v3054_v61 = vld [vmem:[#allocation16_spill] sm:$0xff] }
 0x1fa   :  { %v1754_v47 = vpop.f32.mrf.mxu1  ;;  %v355_v55 = vpop.f32.mrf.mxu0 }
 0x1fb   :  { %v1535_v50 = vmul.f32 -1.442695, %v428_v63  ;;  %v435_v39 = vadd.f32 %v355_v55, %v285_v53  ;;  %v3055_v55 = vld [vmem:[#allocation11_spill] sm:$0xff] }
 0x1fd   :  { %1985 = vpow2.f32 %v1535_v50  ;;  %v1536_v52 = vmul.f32 -1.442695, %v435_v39 }
 0x1ff   :  { %1987 = vpow2.f32 %v1536_v52  ;;  %v456_v52 = vpop.permute.xlu0 %455 }
 0x200   :  { %vm457_vm10 = vcmp.eq.s32.totalorder %v456_v52, 1 }
 0x20a   :  { %v1986_v56 = vpop.eup %1985 }
 0x20b   :  { %v432_v45 = vadd.f32 1.0, %v1986_v56  ;;  %v460_v56 = vld [vmem:[#allocation2 + $0x30] sm:$0xff] }
 0x20c   :  { %v1988_v62 = vpop.eup %1987 }
 0x20d   :  { %1989 = vrcp.f32 %v432_v45  ;;  %v439_v57 = vadd.f32 1.0, %v1988_v62 }
 0x20f   :  { %1991 = vrcp.f32 %v439_v57 }
 0x21a   :  { %v1990_v58 = vpop.eup %1989 }
 0x21b   :  { %v443_v51 = vmul.f32 %v1990_v58, %v442_v54 }
 0x21c   :  { %v1992_v60 = vpop.eup %1991 }
 0x21d   :  { %v444_v59 = vadd.f32 %v443_v51, %v286_v43  ;;  %v446_v63 = vsub.f32 1.0, %v1992_v60  ;;  %v448_v39 = vmul.f32 %v1992_v60, %v2466_v2  ;;  %v3052_v43 = vld [vmem:[#allocation13_spill] sm:$0xff]  ;;  %v3053_v51 = vld [vmem:[#allocation14_spill] sm:$0xff] }
 0x21e   :  { %v461_v60 = vld [vmem:[#allocation2 + $0x38] sm:$0xff] }
 0x21f   :  { %1993 = vtanh.f32 %v444_v59 }
 0x22c   :  { %v1994_v47 = vpop.eup %1993 }
 0x22d   :  { %v447_v50 = vmul.f32 %v1994_v47, %v446_v63 }
 0x22f   :  { %v449_v53 = vadd.f32 %v448_v39, %v447_v50 }
 0x231   :  { %v2546_v45 = vsel %vm457_vm10, %v449_v53, %v2466_v2  ;;  %v3051_v2 = vld [vmem:[#allocation15_spill] sm:$0xff] }
 0x232   :  { %528 = vmatmul.mubr.f32.vlgmr.msra.gmra.mxu0 %v2546_v45  ;;  %1788 = vmatmul.mubr.f32.vlgmr.msra.gmra.mxu1 %v2546_v45 }
 0x233   :  { %640 = vmatpush1.msra.mxu0 %v2219_v3  ;;  %1791 = vmatpush3.msra.mxu1 %v2253_v15 }
 0x234   :  { %641 = vmatprep.subr.mxu0 %v2221_v4  ;;  %1792 = vmatprep.subr.mxu1 %v3047_v0 }
 0x235   :  { %642 = vmatpush1.msra.mxu0 %v2224_v5  ;;  %1793 = vmatpush3.msra.mxu1 %v2259_v17 }
 0x236   :  { %643 = vmatprep.subr.mxu0 %v2227_v6  ;;  %1794 = vmatprep.subr.mxu1 %v3047_v0 }
 0x237   :  { %644 = vmatpush1.msra.mxu0 %v2230_v7  ;;  %1795 = vmatpush3.msra.mxu1 %v2265_v19 }
 0x238   :  { %645 = vmatprep.subr.mxu0 %v2233_v8  ;;  %1796 = vmatprep.subr.mxu1 %v3047_v0 }
 0x239   :  { %646 = vmatpush1.msra.mxu0 %v2236_v9  ;;  %1797 = vmatpush3.msra.mxu1 %v2275_v22 }
 0x23a   :  { %647 = vmatprep.subr.mxu0 %v2239_v10  ;;  %1798 = vmatprep.subr.mxu1 %v3047_v0 }
 0x23b   :  { %648 = vmatpush1.msra.mxu0 %v2242_v11  ;;  %1799 = vmatpush3.msra.mxu1 %v2285_v25 }
 0x23c   :  { %649 = vmatprep.subr.mxu0 %v2245_v12  ;;  %1800 = vmatprep.subr.mxu1 %v3047_v0 }
 0x23d   :  { %650 = vmatpush1.msra.mxu0 %v2248_v13  ;;  %1801 = vmatpush3.msra.mxu1 %v2295_v28 }
 0x23e   :  { %651 = vmatprep.subr.mxu0 %v2251_v14  ;;  %1802 = vmatprep.subr.mxu1 %v3047_v0 }
 0x23f   :  { %652 = vmatpush1.msra.mxu0 %v2256_v16  ;;  %1803 = vmatpush3.msra.mxu1 %v2305_v31 }
 0x240   :  { %653 = vmatprep.subr.mxu0 %v2262_v18  ;;  %1804 = vmatprep.subr.mxu1 %v3047_v0 }
 0x241   :  { %654 = vmatpush1.msra.mxu0 %v2268_v20  ;;  %1805 = vmatpush3.msra.mxu1 %v2315_v34 }
 0x242   :  { %655 = vmatprep.subr.mxu0 %v2272_v21  ;;  %1806 = vmatprep.subr.mxu1 %v3047_v0 }
 0x243   :  { %656 = vmatpush1.msra.mxu0 %v2278_v23  ;;  %1807 = vmatpush3.msra.mxu1 %v2325_v37 }
 0x244   :  { %657 = vmatprep.subr.mxu0 %v2282_v24  ;;  %1808 = vmatprep.subr.mxu1 %v3047_v0 }
 0x245   :  { %658 = vmatpush1.msra.mxu0 %v2288_v26  ;;  %1809 = vmatpush3.msra.mxu1 %v2340_v41 }
 0x246   :  { %659 = vmatprep.subr.mxu0 %v2292_v27  ;;  %1810 = vmatprep.subr.mxu1 %v3047_v0 }
 0x247   :  { %660 = vmatpush1.msra.mxu0 %v2298_v29  ;;  %1811 = vmatpush3.msra.mxu1 %v2350_v44 }
 0x248   :  { %661 = vmatprep.subr.mxu0 %v2302_v30  ;;  %1812 = vmatprep.subr.mxu1 %v3047_v0 }
 0x249   :  { %662 = vmatpush1.msra.mxu0 %v2308_v32  ;;  %1813 = vmatpush3.msra.mxu1 %v2359_v46 }
 0x24a   :  { %663 = vmatprep.subr.mxu0 %v2312_v33  ;;  %1814 = vmatprep.subr.mxu1 %v3047_v0 }
 0x24b   :  { %664 = vmatpush1.msra.mxu0 %v2318_v35  ;;  %1815 = vmatpush3.msra.mxu1 %v2366_v48 }
 0x24c   :  { %665 = vmatprep.subr.mxu0 %v2322_v36  ;;  %1816 = vmatprep.subr.mxu1 %v3047_v0 }
 0x24d   :  { %666 = vmatpush1.msra.mxu0 %v2328_v38  ;;  %1817 = vmatpush3.msra.mxu1 %v2372_v49 }
 0x24e   :  { %667 = vmatprep.subr.mxu0 %v2337_v40  ;;  %1818 = vmatprep.subr.mxu1 %v3047_v0 }
 0x24f   :  { %668 = vmatpush1.msra.mxu0 %v2343_v42  ;;  %1819 = vmatpush3.msra.mxu1 %v3051_v2 }
 0x250   :  { %669 = vmatprep.subr.mxu0 %v3052_v43  ;;  %1820 = vmatprep.subr.mxu1 %v3047_v0  ;;  %v462_v43 = vld [vmem:[#allocation2 + $0x40] sm:$0xff] }
 0x251   :  { %670 = vmatpush1.msra.mxu0 %v3053_v51  ;;  %703 = vmatprep.mubr.f32.mxu0 %v3047_v0 }
 0x252   :  { %1821 = vmatpush3.msra.mxu1 %v3054_v61  ;;  %1822 = vmatprep.mubr.msk.f32.mxu1 %vm2177_vm0, %v3047_v0 }
 0x253   :  { %815 = vmatprep.subr.mxu0 %v3055_v55  ;;  %1825 = vmatprep.subr.mxu1 %v3047_v0 }
 0x2f2   :  { %v529_v62 = vpop.f32.mrf.mxu0  ;;  %v600_v57 = vpop.f32.mrf.mxu1 }
 0x2f3   :  { %v604_v54 = vadd.f32 %v529_v62, %v460_v56  ;;  %v618_v55 = vadd.f32 %v2463_v1, %v600_v57  ;;  %v2728_v57 = vld [vmem:[#allocation5 + $0x120] sm:$0xff] }
 0x2f4   :  { %v1789_v58 = vpop.f32.mrf.mxu1  ;;  %v531_v63 = vpop.f32.mrf.mxu0 }
 0x2f5   :  { %v1537_v59 = vmul.f32 -1.442695, %v604_v54  ;;  %v611_v47 = vadd.f32 %v531_v63, %v461_v60 }
 0x2f7   :  { %1995 = vpow2.f32 %v1537_v59  ;;  %v1538_v50 = vmul.f32 -1.442695, %v611_v47  ;;  %v632_v59 = vpop.permute.xlu1 %631 }
 0x2f8   :  { %vm633_vm11 = vcmp.eq.s32.totalorder %v632_v59, 1  ;;  %v2754_v59 = vld [vmem:[#allocation5 + $0xe0] sm:$0xff] }
 0x2f9   :  { %1997 = vpow2.f32 %v1538_v50 }
 0x304   :  { %v1996_v39 = vpop.eup %1995 }
 0x305   :  { %v608_v52 = vadd.f32 1.0, %v1996_v39  ;;  %v2731_v39 = vld [vmem:[#allocation5 + $0x130] sm:$0xff] }
 0x306   :  { %v1998_v53 = vpop.eup %1997 }
 0x307   :  { %1999 = vrcp.f32 %v608_v52  ;;  %v615_v61 = vadd.f32 1.0, %v1998_v53  ;;  %v2734_v52 = vld [vmem:[#allocation5 + $0x110] sm:$0xff]  ;;  %v2738_v53 = vld [vmem:[#allocation5 + $0x108] sm:$0xff] }
 0x309   :  { %2001 = vrcp.f32 %v615_v61  ;;  %v2721_v61 = vld [vmem:[#allocation5 + $0x148] sm:$0xff] }
 0x314   :  { %v2000_v51 = vpop.eup %1999 }
 0x315   :  { %v619_v2 = vmul.f32 %v2000_v51, %v618_v55  ;;  %v2718_v51 = vld [vmem:[#allocation5 + $0x138] sm:$0xff]  ;;  %v2724_v55 = vld [vmem:[#allocation5 + $0x128] sm:$0xff] }
 0x316   :  { %v2002_v62 = vpop.eup %2001 }
 0x317   :  { %v620_v56 = vadd.f32 %v619_v2, %v462_v43  ;;  %v622_v54 = vsub.f32 1.0, %v2002_v62  ;;  %v624_v63 = vmul.f32 %v2002_v62, %v2546_v45  ;;  %v2711_v2 = vld [vmem:[#allocation5 + $0x160] sm:$0xff]  ;;  %v2744_v62 = vld [vmem:[#allocation5 + $0xf8] sm:$0xff] }
 0x318   :  { %v2714_v43 = vld [vmem:[#allocation5 + $0x140] sm:$0xff] }
 0x319   :  { %2003 = vtanh.f32 %v620_v56  ;;  %v2741_v56 = vld [vmem:[#allocation5 + $0x118] sm:$0xff] }
 0x326   :  { %v2004_v58 = vpop.eup %2003 }
 0x327   :  { %v623_v60 = vmul.f32 %v2004_v58, %v622_v54  ;;  %v2748_v54 = vld [vmem:[#allocation5 + $0xf0] sm:$0xff]  ;;  %v2751_v58 = vld [vmem:[#allocation5 + $0x100] sm:$0xff] }
 0x329   :  { %v625_v47 = vadd.f32 %v624_v63, %v623_v60  ;;  %v2758_v60 = vld [vmem:[#allocation5 + $0xd8] sm:$0xff]  ;;  %v2762_v63 = vld [vmem:[#allocation5 + $0xc8] sm:$0xff] }
 0x32b   :  { %v2620_v50 = vsel %vm633_vm11, %v625_v47, %v2546_v45  ;;  %v2708_v45 = vld [vmem:[#allocation5 + $0x150] sm:$0xff]  ;;  %v2766_v47 = vld [vmem:[#allocation5 + $0xc0] sm:$0xff] }
 0x32c   :  { %704 = vmatmul.mubr.f32.vlgmr.msra.gmra.mxu0 %v2620_v50  ;;  %1823 = vmatmul.mubr.f32.vlgmr.msra.gmra.mxu1 %v2620_v50 }
 0x32d   :  { %816 = vmatpush1.msra.mxu0 %v2219_v3  ;;  %1826 = vmatpush3.msra.mxu1 %v2253_v15  ;;  %v3056_v3 = vld [vmem:[#allocation15_spill] sm:$0xff] }
 0x32e   :  { %817 = vmatprep.subr.mxu0 %v2221_v4  ;;  %1827 = vmatprep.subr.mxu1 %v3047_v0  ;;  %v3057_v4 = vld [vmem:[#allocation13_spill] sm:$0xff] }
 0x32f   :  { %818 = vmatpush1.msra.mxu0 %v2224_v5  ;;  %1828 = vmatpush3.msra.mxu1 %v2259_v17  ;;  %v3058_v5 = vld [vmem:[#allocation14_spill] sm:$0xff] }
 0x330   :  { %819 = vmatprep.subr.mxu0 %v2227_v6  ;;  %1829 = vmatprep.subr.mxu1 %v3047_v0  ;;  %v3059_v6 = vld [vmem:[#allocation16_spill] sm:$0xff] }
 0x331   :  { %820 = vmatpush1.msra.mxu0 %v2230_v7  ;;  %1830 = vmatpush3.msra.mxu1 %v2265_v19  ;;  %v3060_v7 = vld [vmem:[#allocation11_spill] sm:$0xff] }
 0x332   :  { %821 = vmatprep.subr.mxu0 %v2233_v8  ;;  %1831 = vmatprep.subr.mxu1 %v3047_v0  ;;  %v636_v8 = vld [vmem:[#allocation2 + $0x48] sm:$0xff] }
 0x333   :  { %822 = vmatpush1.msra.mxu0 %v2236_v9  ;;  %1832 = vmatpush3.msra.mxu1 %v2275_v22 }
 0x334   :  { %823 = vmatprep.subr.mxu0 %v2239_v10  ;;  %1833 = vmatprep.subr.mxu1 %v3047_v0 }
 0x335   :  { %824 = vmatpush1.msra.mxu0 %v2242_v11  ;;  %1834 = vmatpush3.msra.mxu1 %v2285_v25 }
 0x336   :  { %825 = vmatprep.subr.mxu0 %v2245_v12  ;;  %1835 = vmatprep.subr.mxu1 %v3047_v0 }
 0x337   :  { %826 = vmatpush1.msra.mxu0 %v2248_v13  ;;  %1836 = vmatpush3.msra.mxu1 %v2295_v28 }
 0x338   :  { %827 = vmatprep.subr.mxu0 %v2251_v14  ;;  %1837 = vmatprep.subr.mxu1 %v3047_v0  ;;  %v637_v14 = vld [vmem:[#allocation2 + $0x50] sm:$0xff] }
 0x339   :  { %828 = vmatpush1.msra.mxu0 %v2256_v16  ;;  %1838 = vmatpush3.msra.mxu1 %v2305_v31 }
 0x33a   :  { %829 = vmatprep.subr.mxu0 %v2262_v18  ;;  %1839 = vmatprep.subr.mxu1 %v3047_v0 }
 0x33b   :  { %830 = vmatpush1.msra.mxu0 %v2268_v20  ;;  %1840 = vmatpush3.msra.mxu1 %v2315_v34 }
 0x33c   :  { %831 = vmatprep.subr.mxu0 %v2272_v21  ;;  %1841 = vmatprep.subr.mxu1 %v3047_v0 }
 0x33d   :  { %832 = vmatpush1.msra.mxu0 %v2278_v23  ;;  %1842 = vmatpush3.msra.mxu1 %v2325_v37 }
 0x33e   :  { %833 = vmatprep.subr.mxu0 %v2282_v24  ;;  %1843 = vmatprep.subr.mxu1 %v3047_v0  ;;  %v638_v24 = vld [vmem:[#allocation2 + $0x58] sm:$0xff] }
 0x33f   :  { %834 = vmatpush1.msra.mxu0 %v2288_v26  ;;  %1844 = vmatpush3.msra.mxu1 %v2340_v41 }
 0x340   :  { %835 = vmatprep.subr.mxu0 %v2292_v27  ;;  %1845 = vmatprep.subr.mxu1 %v3047_v0 }
 0x341   :  { %836 = vmatpush1.msra.mxu0 %v2298_v29  ;;  %1846 = vmatpush3.msra.mxu1 %v2350_v44 }
 0x342   :  { %837 = vmatprep.subr.mxu0 %v2302_v30  ;;  %1847 = vmatprep.subr.mxu1 %v3047_v0 }
 0x343   :  { %838 = vmatpush1.msra.mxu0 %v2308_v32  ;;  %1848 = vmatpush3.msra.mxu1 %v2359_v46 }
 0x344   :  { %839 = vmatprep.subr.mxu0 %v2312_v33  ;;  %1849 = vmatprep.subr.mxu1 %v3047_v0  ;;  %v808_v33 = vpop.permute.xlu1 %807 }
 0x345   :  { %840 = vmatpush1.msra.mxu0 %v2318_v35  ;;  %1850 = vmatpush3.msra.mxu1 %v2366_v48  ;;  %vm809_vm12 = vcmp.eq.s32.totalorder %v808_v33, 1 }
 0x346   :  { %841 = vmatprep.subr.mxu0 %v2322_v36  ;;  %1851 = vmatprep.subr.mxu1 %v3047_v0 }
 0x347   :  { %842 = vmatpush1.msra.mxu0 %v2328_v38  ;;  %1852 = vmatpush3.msra.mxu1 %v2372_v49  ;;  %v2698_v38 = vld [vmem:[#allocation5 + $0x168] sm:$0xff] }
 0x348   :  { %843 = vmatprep.subr.mxu0 %v2337_v40  ;;  %1853 = vmatprep.subr.mxu1 %v3047_v0  ;;  %v2701_v40 = vld [vmem:[#allocation5 + $0x178] sm:$0xff] }
 0x349   :  { %844 = vmatpush1.msra.mxu0 %v2343_v42  ;;  %1854 = vmatpush3.msra.mxu1 %v3056_v3  ;;  %v2704_v42 = vld [vmem:[#allocation5 + $0x158] sm:$0xff] }
 0x34a   :  { %845 = vmatprep.subr.mxu0 %v3057_v4  ;;  %1855 = vmatprep.subr.mxu1 %v3047_v0  ;;  %v2774_v4 = vld [vmem:[#allocation5 + $0xa8] sm:$0xff] }
 0x34b   :  { %846 = vmatpush1.msra.mxu0 %v3058_v5  ;;  %879 = vmatprep.mubr.f32.mxu0 %v3047_v0  ;;  %v2782_v5 = vld [vmem:[#allocation5 + $0x90] sm:$0xff] }
 0x34c   :  { %1856 = vmatpush3.msra.mxu1 %v3059_v6  ;;  %1857 = vmatprep.mubr.msk.f32.mxu1 %vm2177_vm0, %v3047_v0 }
 0x34d   :  { %991 = vmatprep.subr.mxu0 %v3060_v7  ;;  %1860 = vmatprep.subr.mxu1 %v3047_v0  ;;  %v2790_v7 = vld [vmem:[#allocation5 + $0x78] sm:$0xff] }
 0x3ec   :  { %v705_v9 = vpop.f32.mrf.mxu0  ;;  %v776_v10 = vpop.f32.mrf.mxu1 }
 0x3ed   :  { %v780_v11 = vadd.f32 %v705_v9, %v636_v8  ;;  %v794_v22 = vadd.f32 %v2463_v1, %v776_v10  ;;  %v2798_v8 = vld [vmem:[#allocation5 + $0x60] sm:$0xff]  ;;  %v2806_v9 = vld [vmem:[#allocation5 + $0x48] sm:$0xff]  ;;  %v2814_v10 = vld [vmem:[#allocation5 + $0x30] sm:$0xff] }
 0x3ee   :  { %v1824_v12 = vpop.f32.mrf.mxu1  ;;  %v707_v15 = vpop.f32.mrf.mxu0 }
 0x3ef   :  { %v1539_v13 = vmul.f32 -1.442695, %v780_v11  ;;  %v787_v16 = vadd.f32 %v707_v15, %v637_v14  ;;  %v2822_v11 = vld [vmem:[#allocation5 + $0x18] sm:$0xff]  ;;  %v2830_v12 = vld [vmem:[#allocation5] sm:$0xff] }
 0x3f1   :  { %2005 = vpow2.f32 %v1539_v13  ;;  %v1540_v17 = vmul.f32 -1.442695, %v787_v16 }
 0x3f3   :  { %2007 = vpow2.f32 %v1540_v17 }
 0x3fe   :  { %v2006_v18 = vpop.eup %2005 }
 0x3ff   :  { %v784_v19 = vadd.f32 1.0, %v2006_v18  ;;  %v813_v18 = vld [vmem:[#allocation2 + $0x68] sm:$0xff] }
 0x400   :  { %v2008_v20 = vpop.eup %2007 }
 0x401   :  { %2009 = vrcp.f32 %v784_v19  ;;  %v791_v21 = vadd.f32 1.0, %v2008_v20 }
 0x403   :  { %2011 = vrcp.f32 %v791_v21 }
 0x40e   :  { %v2010_v23 = vpop.eup %2009 }
 0x40f   :  { %v795_v25 = vmul.f32 %v2010_v23, %v794_v22 }
 0x410   :  { %v2012_v27 = vpop.eup %2011 }
 0x411   :  { %v796_v26 = vadd.f32 %v795_v25, %v638_v24  ;;  %v798_v28 = vsub.f32 1.0, %v2012_v27  ;;  %v800_v32 = vmul.f32 %v2012_v27, %v2620_v50  ;;  %v814_v27 = vld [vmem:[#allocation2 + $0x70] sm:$0xff] }
 0x413   :  { %2013 = vtanh.f32 %v796_v26 }
 0x420   :  { %v2014_v29 = vpop.eup %2013 }
 0x421   :  { %v799_v30 = vmul.f32 %v2014_v29, %v798_v28 }
 0x423   :  { %v801_v35 = vadd.f32 %v800_v32, %v799_v30 }
 0x425   :  { %v2694_v36 = vsel %vm809_vm12, %v801_v35, %v2620_v50  ;;  %v2770_v50 = vld [vmem:[#allocation5 + $0xb0] sm:$0xff] }
 0x426   :  { %880 = vmatmul.mubr.f32.vlgmr.msra.gmra.mxu0 %v2694_v36  ;;  %1858 = vmatmul.mubr.f32.vlgmr.msra.gmra.mxu1 %v2694_v36 }
 0x427   :  { %992 = vmatpush1.msra.mxu0 %v2698_v38  ;;  %1861 = vmatpush3.msra.mxu1 %v2701_v40 }
 0x428   :  { %993 = vmatprep.subr.mxu0 %v2704_v42  ;;  %1862 = vmatprep.subr.mxu1 %v3047_v0 }
 0x429   :  { %994 = vmatpush1.msra.mxu0 %v2708_v45  ;;  %1863 = vmatpush3.msra.mxu1 %v2711_v2 }
 0x42a   :  { %995 = vmatprep.subr.mxu0 %v2714_v43  ;;  %1864 = vmatprep.subr.mxu1 %v3047_v0 }
 0x42b   :  { %996 = vmatpush1.msra.mxu0 %v2718_v51  ;;  %1865 = vmatpush3.msra.mxu1 %v2721_v61 }
 0x42c   :  { %997 = vmatprep.subr.mxu0 %v2724_v55  ;;  %1866 = vmatprep.subr.mxu1 %v3047_v0 }
 0x42d   :  { %998 = vmatpush1.msra.mxu0 %v2728_v57  ;;  %1867 = vmatpush3.msra.mxu1 %v2731_v39 }
 0x42e   :  { %999 = vmatprep.subr.mxu0 %v2734_v52  ;;  %1868 = vmatprep.subr.mxu1 %v3047_v0 }
 0x42f   :  { %1000 = vmatpush1.msra.mxu0 %v2738_v53  ;;  %1869 = vmatpush3.msra.mxu1 %v2741_v56 }
 0x430   :  { %1001 = vmatprep.subr.mxu0 %v2744_v62  ;;  %1870 = vmatprep.subr.mxu1 %v3047_v0 }
 0x431   :  { %1002 = vmatpush1.msra.mxu0 %v2748_v54  ;;  %1871 = vmatpush3.msra.mxu1 %v2751_v58 }
 0x432   :  { %1003 = vmatprep.subr.mxu0 %v2754_v59  ;;  %1872 = vmatprep.subr.mxu1 %v3047_v0 }
 0x433   :  { %1004 = vmatpush1.msra.mxu0 %v2758_v60  ;;  %1873 = vmatpush3.msra.mxu1 %v2305_v31  ;;  %v2778_v31 = vld [vmem:[#allocation5 + $0x98] sm:$0xff] }
 0x434   :  { %1005 = vmatprep.subr.mxu0 %v2762_v63  ;;  %1874 = vmatprep.subr.mxu1 %v3047_v0 }
 0x435   :  { %1006 = vmatpush1.msra.mxu0 %v2766_v47  ;;  %1875 = vmatpush3.msra.mxu1 %v2315_v34  ;;  %v2786_v34 = vld [vmem:[#allocation5 + $0x80] sm:$0xff] }
 0x436   :  { %1007 = vmatprep.subr.mxu0 %v2770_v50  ;;  %1876 = vmatprep.subr.mxu1 %v3047_v0 }
 0x437   :  { %1008 = vmatpush1.msra.mxu0 %v2774_v4  ;;  %1877 = vmatpush3.msra.mxu1 %v2325_v37  ;;  %v2794_v37 = vld [vmem:[#allocation5 + $0x68] sm:$0xff] }
 0x438   :  { %1009 = vmatprep.subr.mxu0 %v2778_v31  ;;  %1878 = vmatprep.subr.mxu1 %v3047_v0 }
 0x439   :  { %1010 = vmatpush1.msra.mxu0 %v2782_v5  ;;  %1879 = vmatpush3.msra.mxu1 %v2340_v41  ;;  %v2802_v41 = vld [vmem:[#allocation5 + $0x50] sm:$0xff] }
 0x43a   :  { %1011 = vmatprep.subr.mxu0 %v2786_v34  ;;  %1880 = vmatprep.subr.mxu1 %v3047_v0 }
 0x43b   :  { %1012 = vmatpush1.msra.mxu0 %v2790_v7  ;;  %1881 = vmatpush3.msra.mxu1 %v2350_v44  ;;  %v2810_v44 = vld [vmem:[#allocation5 + $0x38] sm:$0xff] }
 0x43c   :  { %1013 = vmatprep.subr.mxu0 %v2794_v37  ;;  %1882 = vmatprep.subr.mxu1 %v3047_v0 }
 0x43d   :  { %1014 = vmatpush1.msra.mxu0 %v2798_v8  ;;  %1883 = vmatpush3.msra.mxu1 %v2359_v46  ;;  %v2818_v46 = vld [vmem:[#allocation5 + $0x20] sm:$0xff] }
 0x43e   :  { %1015 = vmatprep.subr.mxu0 %v2802_v41  ;;  %1884 = vmatprep.subr.mxu1 %v3047_v0 }
 0x43f   :  { %1016 = vmatpush1.msra.mxu0 %v2806_v9  ;;  %1885 = vmatpush3.msra.mxu1 %v2366_v48  ;;  %v2826_v48 = vld [vmem:[#allocation5 + $0x8] sm:$0xff] }
 0x440   :  { %1017 = vmatprep.subr.mxu0 %v2810_v44  ;;  %1886 = vmatprep.subr.mxu1 %v3047_v0 }
 0x441   :  { %1018 = vmatpush1.msra.mxu0 %v2814_v10  ;;  %1887 = vmatpush3.msra.mxu1 %v2372_v49  ;;  %v2837_v49 = vld [vmem:[#allocation5 + $0x170] sm:$0xff] }
 0x442   :  { %1019 = vmatprep.subr.mxu0 %v2818_v46  ;;  %1888 = vmatprep.subr.mxu1 %v3047_v0 }
 0x443   :  { %1020 = vmatpush1.msra.mxu0 %v2822_v11  ;;  %1889 = vmatpush3.msra.mxu1 %v3056_v3  ;;  %v812_v3 = vld [vmem:[#allocation2 + $0x60] sm:$0xff] }
 0x444   :  { %1021 = vmatprep.subr.mxu0 %v2826_v48  ;;  %1890 = vmatprep.subr.mxu1 %v3047_v0 }
 0x445   :  { %1022 = vmatpush1.msra.mxu0 %v2830_v12  ;;  %1055 = vmatprep.mubr.f32.mxu0 %v3047_v0 }
 0x446   :  { %1891 = vmatpush3.msra.mxu1 %v3059_v6  ;;  %1892 = vmatprep.mubr.msk.f32.mxu1 %vm2177_vm0, %v3047_v0 }
 0x447   :  { %1167 = vmatprep.subr.mxu0 %v2837_v49  ;;  %1895 = vmatprep.subr.mxu1 %v3047_v0 }
 0x4e6   :  { %v881_v13 = vpop.f32.mrf.mxu0  ;;  %v952_v14 = vpop.f32.mrf.mxu1 }
 0x4e7   :  { %v956_v15 = vadd.f32 %v881_v13, %v812_v3  ;;  %v970_v25 = vadd.f32 %v2463_v1, %v952_v14  ;;  %v984_v13 = vpop.permute.xlu0 %983  ;;  %v2873_v1 = vld [vmem:[#allocation5 + $0xe8] sm:$0xff]  ;;  %v2885_v14 = vld [vmem:[#allocation5 + $0xb8] sm:$0xff] }
 0x4e8   :  { %v1859_v16 = vpop.f32.mrf.mxu1  ;;  %v883_v19 = vpop.f32.mrf.mxu0  ;;  %vm985_vm13 = vcmp.eq.s32.totalorder %v984_v13, 1 }
 0x4e9   :  { %v1541_v17 = vmul.f32 -1.442695, %v956_v15  ;;  %v963_v20 = vadd.f32 %v883_v19, %v813_v18  ;;  %v2897_v18 = vld [vmem:[#allocation5 + $0x88] sm:$0xff]  ;;  %v2903_v19 = vld [vmem:[#allocation5 + $0x70] sm:$0xff] }
 0x4eb   :  { %2015 = vpow2.f32 %v1541_v17  ;;  %v1542_v6 = vmul.f32 -1.442695, %v963_v20  ;;  %v2891_v17 = vld [vmem:[#allocation5 + $0xa0] sm:$0xff]  ;;  %v2909_v20 = vld [vmem:[#allocation5 + $0x58] sm:$0xff] }
 0x4ed   :  { %2017 = vpow2.f32 %v1542_v6  ;;  %v2915_v6 = vld [vmem:[#allocation5 + $0x40] sm:$0xff] }
 0x4f8   :  { %v2016_v21 = vpop.eup %2015 }
 0x4f9   :  { %v960_v22 = vadd.f32 1.0, %v2016_v21  ;;  %v2921_v21 = vld [vmem:[#allocation5 + $0x28] sm:$0xff] }
 0x4fa   :  { %v2018_v23 = vpop.eup %2017 }
 0x4fb   :  { %2019 = vrcp.f32 %v960_v22  ;;  %v967_v24 = vadd.f32 1.0, %v2018_v23  ;;  %v2928_v22 = vld [vmem:[#allocation5 + $0x10] sm:$0xff]  ;;  %v988_v23 = vld [vmem:[#allocation2 + $0x78] sm:$0xff] }
 0x4fc   :  { %3061 = vst [vmem:[#allocation12_spill] sm:$0xff] %v2928_v22 }
 0x4fd   :  { %2021 = vrcp.f32 %v967_v24 }
 0x508   :  { %v2020_v26 = vpop.eup %2019 }
 0x509   :  { %v971_v28 = vmul.f32 %v2020_v26, %v970_v25 }
 0x50a   :  { %v2022_v30 = vpop.eup %2021 }
 0x50b   :  { %v972_v29 = vadd.f32 %v971_v28, %v814_v27  ;;  %v974_v32 = vsub.f32 1.0, %v2022_v30  ;;  %v976_v3 = vmul.f32 %v2022_v30, %v2694_v36 }
 0x50d   :  { %2023 = vtanh.f32 %v972_v29  ;;  %v989_v29 = vld [vmem:[#allocation2 + $0x80] sm:$0xff] }
 0x51a   :  { %v2024_v33 = vpop.eup %2023 }
 0x51b   :  { %v975_v35 = vmul.f32 %v2024_v33, %v974_v32 }
 0x51d   :  { %v977_v15 = vadd.f32 %v976_v3, %v975_v35 }
 0x51f   :  { %v2844_v16 = vsel %vm985_vm13, %v977_v15, %v2694_v36  ;;  %v2879_v36 = vld [vmem:[#allocation5 + $0xd0] sm:$0xff] }
 0x520   :  { %1056 = vmatmul.mubr.f32.vlgmr.msra.gmra.mxu0 %v2844_v16  ;;  %1893 = vmatmul.mubr.f32.vlgmr.msra.gmra.mxu1 %v2844_v16 }
 0x521   :  { %1168 = vmatpush1.msra.mxu0 %v2698_v38  ;;  %1896 = vmatpush3.msra.mxu1 %v2701_v40 }
 0x522   :  { %1169 = vmatprep.subr.mxu0 %v2704_v42  ;;  %1897 = vmatprep.subr.mxu1 %v3047_v0 }
 0x523   :  { %1170 = vmatpush1.msra.mxu0 %v2708_v45  ;;  %1898 = vmatpush3.msra.mxu1 %v2711_v2 }
 0x524   :  { %1171 = vmatprep.subr.mxu0 %v2714_v43  ;;  %1899 = vmatprep.subr.mxu1 %v3047_v0 }
 0x525   :  { %1172 = vmatpush1.msra.mxu0 %v2718_v51  ;;  %1900 = vmatpush3.msra.mxu1 %v2721_v61 }
 0x526   :  { %1173 = vmatprep.subr.mxu0 %v2724_v55  ;;  %1901 = vmatprep.subr.mxu1 %v3047_v0 }
 0x527   :  { %1174 = vmatpush1.msra.mxu0 %v2728_v57  ;;  %1902 = vmatpush3.msra.mxu1 %v2731_v39 }
 0x528   :  { %1175 = vmatprep.subr.mxu0 %v2734_v52  ;;  %1903 = vmatprep.subr.mxu1 %v3047_v0 }
 0x529   :  { %1176 = vmatpush1.msra.mxu0 %v2738_v53  ;;  %1904 = vmatpush3.msra.mxu1 %v2741_v56 }
 0x52a   :  { %1177 = vmatprep.subr.mxu0 %v2744_v62  ;;  %1905 = vmatprep.subr.mxu1 %v3047_v0 }
 0x52b   :  { %1178 = vmatpush1.msra.mxu0 %v2748_v54  ;;  %1906 = vmatpush3.msra.mxu1 %v2751_v58 }
 0x52c   :  { %1179 = vmatprep.subr.mxu0 %v2754_v59  ;;  %1907 = vmatprep.subr.mxu1 %v3047_v0 }
 0x52d   :  { %1180 = vmatpush1.msra.mxu0 %v2758_v60  ;;  %1908 = vmatpush3.msra.mxu1 %v2873_v1 }
 0x52e   :  { %1181 = vmatprep.subr.mxu0 %v2762_v63  ;;  %1909 = vmatprep.subr.mxu1 %v3047_v0 }
 0x52f   :  { %1182 = vmatpush1.msra.mxu0 %v2766_v47  ;;  %1910 = vmatpush3.msra.mxu1 %v2879_v36 }
 0x530   :  { %1183 = vmatprep.subr.mxu0 %v2770_v50  ;;  %1911 = vmatprep.subr.mxu1 %v3047_v0 }
 0x531   :  { %1184 = vmatpush1.msra.mxu0 %v2774_v4  ;;  %1912 = vmatpush3.msra.mxu1 %v2885_v14 }
 0x532   :  { %1185 = vmatprep.subr.mxu0 %v2778_v31  ;;  %1913 = vmatprep.subr.mxu1 %v3047_v0 }
 0x533   :  { %1186 = vmatpush1.msra.mxu0 %v2782_v5  ;;  %1914 = vmatpush3.msra.mxu1 %v2891_v17 }
 0x534   :  { %1187 = vmatprep.subr.mxu0 %v2786_v34  ;;  %1915 = vmatprep.subr.mxu1 %v3047_v0 }
 0x535   :  { %1188 = vmatpush1.msra.mxu0 %v2790_v7  ;;  %1916 = vmatpush3.msra.mxu1 %v2897_v18 }
 0x536   :  { %1189 = vmatprep.subr.mxu0 %v2794_v37  ;;  %1917 = vmatprep.subr.mxu1 %v3047_v0 }
 0x537   :  { %1190 = vmatpush1.msra.mxu0 %v2798_v8  ;;  %1918 = vmatpush3.msra.mxu1 %v2903_v19 }
 0x538   :  { %1191 = vmatprep.subr.mxu0 %v2802_v41  ;;  %1919 = vmatprep.subr.mxu1 %v3047_v0 }
 0x539   :  { %1192 = vmatpush1.msra.mxu0 %v2806_v9  ;;  %1920 = vmatpush3.msra.mxu1 %v2909_v20 }
 0x53a   :  { %1193 = vmatprep.subr.mxu0 %v2810_v44  ;;  %1921 = vmatprep.subr.mxu1 %v3047_v0 }
 0x53b   :  { %1194 = vmatpush1.msra.mxu0 %v2814_v10  ;;  %1922 = vmatpush3.msra.mxu1 %v2915_v6 }
 0x53c   :  { %1195 = vmatprep.subr.mxu0 %v2818_v46  ;;  %1923 = vmatprep.subr.mxu1 %v3047_v0 }
 0x53d   :  { %1196 = vmatpush1.msra.mxu0 %v2822_v11  ;;  %1924 = vmatpush3.msra.mxu1 %v2921_v21 }
 0x53e   :  { %1197 = vmatprep.subr.mxu0 %v2826_v48  ;;  %1925 = vmatprep.subr.mxu1 %v3047_v0 }
 0x53f   :  { %1198 = vmatpush1.msra.mxu0 %v2830_v12  ;;  %1231 = vmatprep.mubr.f32.mxu0 %v3047_v0 }
 0x540   :  { %1926 = vmatpush3.msra.mxu1 %v2928_v22  ;;  %1927 = vmatprep.mubr.msk.f32.mxu1 %vm2177_vm0, %v3047_v0 }
 0x541   :  { %1343 = vmatprep.subr.mxu0 %v2837_v49  ;;  %1930 = vmatprep.subr.mxu1 %v3047_v0  ;;  %v2938_v49 = vld [vmem:[%s3022_s3] ss:$0 sm:$0xff]  ;;  %s2179_s3 = smov [#allocation7]  }
 0x542   :  { %s1522_s30 = sshll.u32 %s2179_s3, 4  ;;  %s1523_s30 = int_to_ptr.vmem [resolvable:$true] %s1522_s30 }
 0x543   :  { %s2146_s5 = scalar_lea.vmem %s1523_s30, 128  ;;  %p2151_p11 = scmp.lt.s32.totalorder %s1523_s30, %s1523_s30 }
 0x544   :  { %p2147_p10 = scmp.ne.s32.totalorder %s1523_s30, %s2146_s5  ;;  %p2152_p12 = scmp.lt.s32.totalorder %s2146_s5, %s2146_s5 }
 0x546   :  { %p2153_p13 = por %p2152_p12, %p2151_p11 }
 0x548   :  { %p2154_p0 = pnand %p2153_p13, %p2147_p10 }
 0x5e0   :  { %v1057_v24 = vpop.f32.mrf.mxu0  ;;  %v1128_v25 = vpop.f32.mrf.mxu1 }
 0x5e1   :  { %v1132_v26 = vadd.f32 %v1057_v24, %v988_v23  ;;  %v1146_v23 = vadd.f32 %v2938_v49, %v1128_v25 }
 0x5e2   :  { %v1894_v27 = vpop.f32.mrf.mxu1  ;;  %v1059_v30 = vpop.f32.mrf.mxu0 }
 0x5e3   :  { %v1543_v28 = vmul.f32 -1.442695, %v1132_v26  ;;  %v1139_v32 = vadd.f32 %v1059_v30, %v989_v29  ;;  %v990_v26 = vld [vmem:[#allocation2 + $0x88] sm:$0xff] }
 0x5e5   :  { %2025 = vpow2.f32 %v1543_v28  ;;  %v1544_v33 = vmul.f32 -1.442695, %v1139_v32 }
 0x5e7   :  { %2027 = vpow2.f32 %v1544_v33 }
 0x5f2   :  { %v2026_v35 = vpop.eup %2025 }
 0x5f3   :  { %v1136_v3 = vadd.f32 1.0, %v2026_v35 }
 0x5f4   :  { %v2028_v13 = vpop.eup %2027 }
 0x5f5   :  { %2029 = vrcp.f32 %v1136_v3  ;;  %v1143_v15 = vadd.f32 1.0, %v2028_v13  ;;  %v1160_v3 = vpop.permute.xlu1 %1159 }
 0x5f6   :  { %vm1161_vm14 = vcmp.eq.s32.totalorder %v1160_v3, 1 }
 0x5f7   :  { %2031 = vrcp.f32 %v1143_v15 }
 0x5f9   :  { %v1512_v15 = vpop.permute.xlu1 %1511 }
 0x602   :  { %v2030_v24 = vpop.eup %2029 }
 0x603   :  { %v1147_v27 = vmul.f32 %v2030_v24, %v1146_v23 }
 0x604   :  { %v2032_v29 = vpop.eup %2031 }
 0x605   :  { %v1148_v28 = vadd.f32 %v1147_v27, %v990_v26  ;;  %v1150_v30 = vsub.f32 1.0, %v2032_v29  ;;  %v1152_v35 = vmul.f32 %v2032_v29, %v2844_v16 }
 0x607   :  { %2033 = vtanh.f32 %v1148_v28 }
 0x614   :  { %v2034_v32 = vpop.eup %2033 }
 0x615   :  { %v1151_v33 = vmul.f32 %v2034_v32, %v1150_v30 }
 0x617   :  { %v1153_v13 = vadd.f32 %v1152_v35, %v1151_v33 }
 0x619   :  { %v2943_v22 = vsel %vm1161_vm14, %v1153_v13, %v2844_v16 }
 0x61a   :  { %1232 = vmatmul.mubr.f32.vlgmr.msra.gmra.mxu0 %v2943_v22  ;;  %1928 = vmatmul.mubr.f32.vlgmr.msra.gmra.mxu1 %v2943_v22 }
 0x61b   :  { %1344 = vmatpush1.msra.mxu0 %v2698_v38  ;;  %1931 = vmatpush3.msra.mxu1 %v2701_v40  ;;  %v3062_v38 = vld [vmem:[#allocation12_spill] sm:$0xff] }
 0x61c   :  { %1345 = vmatprep.subr.mxu0 %v2704_v42  ;;  %1932 = vmatprep.subr.mxu1 %v3047_v0  ;;  %v1164_v40 = vld [vmem:[#allocation2 + $0x90] sm:$0xff] }
 0x61d   :  { %1346 = vmatpush1.msra.mxu0 %v2708_v45  ;;  %1933 = vmatpush3.msra.mxu1 %v2711_v2 }
 0x61e   :  { %1347 = vmatprep.subr.mxu0 %v2714_v43  ;;  %1934 = vmatprep.subr.mxu1 %v3047_v0 }
 0x61f   :  { %1348 = vmatpush1.msra.mxu0 %v2718_v51  ;;  %1935 = vmatpush3.msra.mxu1 %v2721_v61  ;;  %v1165_v61 = vld [vmem:[#allocation2 + $0x98] sm:$0xff] }
 0x620   :  { %1349 = vmatprep.subr.mxu0 %v2724_v55  ;;  %1936 = vmatprep.subr.mxu1 %v3047_v0 }
 0x621   :  { %1350 = vmatpush1.msra.mxu0 %v2728_v57  ;;  %1937 = vmatpush3.msra.mxu1 %v2731_v39 }
 0x622   :  { %1351 = vmatprep.subr.mxu0 %v2734_v52  ;;  %1938 = vmatprep.subr.mxu1 %v3047_v0 }
 0x623   :  { %1352 = vmatpush1.msra.mxu0 %v2738_v53  ;;  %1939 = vmatpush3.msra.mxu1 %v2741_v56 }
 0x624   :  { %1353 = vmatprep.subr.mxu0 %v2744_v62  ;;  %1940 = vmatprep.subr.mxu1 %v3047_v0 }
 0x625   :  { %1354 = vmatpush1.msra.mxu0 %v2748_v54  ;;  %1941 = vmatpush3.msra.mxu1 %v2751_v58  ;;  %v1166_v58 = vld [vmem:[#allocation2 + $0xa0] sm:$0xff] }
 0x626   :  { %1355 = vmatprep.subr.mxu0 %v2754_v59  ;;  %1942 = vmatprep.subr.mxu1 %v3047_v0 }
 0x627   :  { %1356 = vmatpush1.msra.mxu0 %v2758_v60  ;;  %1943 = vmatpush3.msra.mxu1 %v2873_v1 }
 0x628   :  { %1357 = vmatprep.subr.mxu0 %v2762_v63  ;;  %1944 = vmatprep.subr.mxu1 %v3047_v0 }
 0x629   :  { %1358 = vmatpush1.msra.mxu0 %v2766_v47  ;;  %1945 = vmatpush3.msra.mxu1 %v2879_v36 }
 0x62a   :  { %1359 = vmatprep.subr.mxu0 %v2770_v50  ;;  %1946 = vmatprep.subr.mxu1 %v3047_v0 }
 0x62b   :  { %1360 = vmatpush1.msra.mxu0 %v2774_v4  ;;  %1947 = vmatpush3.msra.mxu1 %v2885_v14  ;;  %v1336_v4 = vpop.permute.xlu0 %1335 }
 0x62c   :  { %1361 = vmatprep.subr.mxu0 %v2778_v31  ;;  %1948 = vmatprep.subr.mxu1 %v3047_v0  ;;  %vm1337_vm15 = vcmp.eq.s32.totalorder %v1336_v4, 1 }
 0x62d   :  { %1362 = vmatpush1.msra.mxu0 %v2782_v5  ;;  %1949 = vmatpush3.msra.mxu1 %v2891_v17 }
 0x62e   :  { %1363 = vmatprep.subr.mxu0 %v2786_v34  ;;  %1950 = vmatprep.subr.mxu1 %v3047_v0 }
 0x62f   :  { %1364 = vmatpush1.msra.mxu0 %v2790_v7  ;;  %1951 = vmatpush3.msra.mxu1 %v2897_v18 }
 0x630   :  { %1365 = vmatprep.subr.mxu0 %v2794_v37  ;;  %1952 = vmatprep.subr.mxu1 %v3047_v0  ;;  %v1340_v37 = vld [vmem:[#allocation2 + $0xa8] sm:$0xff] }
 0x631   :  { %1366 = vmatpush1.msra.mxu0 %v2798_v8  ;;  %1953 = vmatpush3.msra.mxu1 %v2903_v19  ;;  %v1342_v19 = vld [vmem:[#allocation2 + $0xb8] sm:$0xff] }
 0x632   :  { %1367 = vmatprep.subr.mxu0 %v2802_v41  ;;  %1954 = vmatprep.subr.mxu1 %v3047_v0 }
 0x633   :  { %1368 = vmatpush1.msra.mxu0 %v2806_v9  ;;  %1955 = vmatpush3.msra.mxu1 %v2909_v20 }
 0x634   :  { %1369 = vmatprep.subr.mxu0 %v2810_v44  ;;  %1956 = vmatprep.subr.mxu1 %v3047_v0 }
 0x635   :  { %1370 = vmatpush1.msra.mxu0 %v2814_v10  ;;  %1957 = vmatpush3.msra.mxu1 %v2915_v6 }
 0x636   :  { %1371 = vmatprep.subr.mxu0 %v2818_v46  ;;  %1958 = vmatprep.subr.mxu1 %v3047_v0  ;;  %v1341_v46 = vld [vmem:[#allocation2 + $0xb0] sm:$0xff] }
 0x637   :  { %1372 = vmatpush1.msra.mxu0 %v2822_v11  ;;  %1959 = vmatpush3.msra.mxu1 %v2921_v21 }
 0x638   :  { %1373 = vmatprep.subr.mxu0 %v2826_v48  ;;  %1960 = vmatprep.subr.mxu1 %v3047_v0 }
 0x639   :  { %1374 = vmatpush1.msra.mxu0 %v2830_v12  ;;  %1407 = vmatprep.mubr.f32.mxu0 %v3047_v0 }
 0x63a   :  { %1961 = vmatpush3.msra.mxu1 %v3062_v38  ;;  %1962 = vmatprep.mubr.msk.f32.mxu1 %vm2177_vm0, %v3047_v0  ;;  %vm1513_vm0 = vcmp.eq.s32.totalorder %v1512_v15, 1 }
 0x6da   :  { %v1233_v42 = vpop.f32.mrf.mxu0  ;;  %v1304_v45 = vpop.f32.mrf.mxu1 }
 0x6db   :  { %v1308_v2 = vadd.f32 %v1233_v42, %v1164_v40  ;;  %v1322_v54 = vadd.f32 %v2938_v49, %v1304_v45 }
 0x6dc   :  { %v1929_v43 = vpop.f32.mrf.mxu1  ;;  %v1235_v55 = vpop.f32.mrf.mxu0 }
 0x6dd   :  { %v1545_v51 = vmul.f32 -1.442695, %v1308_v2  ;;  %v1315_v57 = vadd.f32 %v1235_v55, %v1165_v61 }
 0x6df   :  { %2035 = vpow2.f32 %v1545_v51  ;;  %v1546_v39 = vmul.f32 -1.442695, %v1315_v57 }
 0x6e1   :  { %2037 = vpow2.f32 %v1546_v39 }
 0x6ec   :  { %v2036_v52 = vpop.eup %2035 }
 0x6ed   :  { %v1312_v53 = vadd.f32 1.0, %v2036_v52 }
 0x6ee   :  { %v2038_v56 = vpop.eup %2037 }
 0x6ef   :  { %2039 = vrcp.f32 %v1312_v53  ;;  %v1319_v62 = vadd.f32 1.0, %v2038_v56 }
 0x6f1   :  { %2041 = vrcp.f32 %v1319_v62 }
 0x6fc   :  { %v2040_v0 = vpop.eup %2039 }
 0x6fd   :  { %v1323_v59 = vmul.f32 %v2040_v0, %v1322_v54 }
 0x6fe   :  { %v2042_v63 = vpop.eup %2041 }
 0x6ff   :  { %v1324_v60 = vadd.f32 %v1323_v59, %v1166_v58  ;;  %v1326_v47 = vsub.f32 1.0, %v2042_v63  ;;  %v1328_v5 = vmul.f32 %v2042_v63, %v2943_v22 }
 0x701   :  { %2043 = vtanh.f32 %v1324_v60 }
 0x70e   :  { %v2044_v50 = vpop.eup %2043 }
 0x70f   :  { %v1327_v31 = vmul.f32 %v2044_v50, %v1326_v47 }
 0x711   :  { %v1329_v34 = vadd.f32 %v1328_v5, %v1327_v31 }
 0x713   :  { %v1338_v7 = vsel %vm1337_vm15, %v1329_v34, %v2943_v22 }
 0x714   :  { %1408 = vmatmul.mubr.f32.vlgmr.msra.gmra.mxu0 %v1338_v7  ;;  %1963 = vmatmul.mubr.f32.vlgmr.msra.gmra.mxu1 %v1338_v7 }
 0x7d4   :  { %v1409_v8 = vpop.f32.mrf.mxu0  ;;  %v1480_v41 = vpop.f32.mrf.mxu1 }
 0x7d5   :  { %v1484_v9 = vadd.f32 %v1409_v8, %v1340_v37  ;;  %v1498_v17 = vadd.f32 %v2938_v49, %v1480_v41 }
 0x7d6   :  { %v1964_v44 = vpop.f32.mrf.mxu1  ;;  %v1411_v11 = vpop.f32.mrf.mxu0 }
 0x7d7   :  { %v1547_v10 = vmul.f32 -1.442695, %v1484_v9  ;;  %v1491_v48 = vadd.f32 %v1411_v11, %v1341_v46 }
 0x7d9   :  { %2045 = vpow2.f32 %v1547_v10  ;;  %v1548_v12 = vmul.f32 -1.442695, %v1491_v48 }
 0x7db   :  { %2047 = vpow2.f32 %v1548_v12 }
 0x7e6   :  { %v2046_v16 = vpop.eup %2045 }
 0x7e7   :  { %v1488_v1 = vadd.f32 1.0, %v2046_v16 }
 0x7e8   :  { %v2048_v36 = vpop.eup %2047 }
 0x7e9   :  { %2049 = vrcp.f32 %v1488_v1  ;;  %v1495_v14 = vadd.f32 1.0, %v2048_v36 }
 0x7eb   :  { %2051 = vrcp.f32 %v1495_v14 }
 0x7f6   :  { %v2050_v18 = vpop.eup %2049 }
 0x7f7   :  { %v1499_v20 = vmul.f32 %v2050_v18, %v1498_v17 }
 0x7f8   :  { %v2052_v21 = vpop.eup %2051 }
 0x7f9   :  { %v1500_v6 = vadd.f32 %v1499_v20, %v1342_v19  ;;  %v1502_v22 = vsub.f32 1.0, %v2052_v21  ;;  %v1504_v24 = vmul.f32 %v2052_v21, %v1338_v7 }
 0x7fb   :  { %2053 = vtanh.f32 %v1500_v6 }
 0x808   :  { %v2054_v25 = vpop.eup %2053 }
 0x809   :  { %v1503_v23 = vmul.f32 %v2054_v25, %v1502_v22 }
 0x80b   :  { %v1505_v26 = vadd.f32 %v1504_v24, %v1503_v23 }
 0x80d   :  { %v1514_v27 = vsel %vm1513_vm0, %v1505_v26, %v1338_v7 }
 0x80e   :  { %1515 = vst [vmem:[#allocation7] sm:$0xff] %v1514_v27 }
 0x80f   :  { %2157 = shalt.err (!%p2154_p0)
}
 0x810   :  { %1525 = dma.vmem_to_hbm [thread:$0]  %s1523_s30, 128, %s3023_s4, [#allocation4]  }
 0x811   :  { %2170 = dma.done.wait [#allocation4], 128  }
 0x812   :  { %2171 = vsyncadd [#allocation4], 4294967168 }
 0x813   :  { %1529 = vsyncpa [#allocation3], 1 }
 0x814   :  { %1530 = vsyncpa [#allocation6], 1 }
 0x815   :  { %1531 = vsyncpa [#allocation4], 1 }

</bundles_post_ra>
